<compile_context>
chip_gen: v7x
topology: tpu7x:2x2x1
jax: 0.10.0
libtpu: 0.0.40
codegen_flags: <defaults>
</compile_context>

<pallas_src>
import functools

import jax
import jax.numpy as jnp
import numpy as np
from jax.experimental import pallas as pl
from jax.experimental.pallas import tpu as pltpu


def _round_up(v, m):
    return ((v + m - 1) // m) * m


# ------------------ fused matmul-chain Pallas kernel (MXU) ------------------ #

def _mlp_kernel(*refs, num_layers, relu_flags):
    """refs = (x_ref, w_0, b_0, ..., w_{L-1}, b_{L-1}, o_ref).

    Computes x <- [relu](x @ W_l + b_l) for every layer inside one kernel;
    all intermediates stay in vregs/VMEM and never touch HBM."""
    x_ref, o_ref = refs[0], refs[-1]
    x = x_ref[...]
    for l in range(num_layers):
        w = refs[1 + 2 * l][...]
        b = refs[2 + 2 * l][...]
        x = jnp.dot(x, w, preferred_element_type=jnp.float32) + b
        if relu_flags[l]:
            x = jnp.maximum(x, 0.0)
    o_ref[...] = x.astype(o_ref.dtype)


def pallas_mlp(x, layers, *, block_m=512):
    """Chain of y = [relu](y @ W + b) computed in a single pallas_call.

    x: (M, K) with K <= padded K of the first layer.
    layers: list of (W_pad, b_pad, relu) where W_pad is (Kp, Np), pre-padded at
    init so consecutive layers chain (Np_l == Kp_{l+1}).  M is tiled into
    `block_m`-row blocks on a "parallel" grid axis (megacore shardable);
    weights/biases use a constant block index, so they are DMA'd into VMEM
    once and stay resident.  Returns the (M, Np_last) result (caller slices
    the valid columns)."""
    M, K = x.shape
    Kp = layers[0][0].shape[0]
    assert K <= Kp
    for (wa, _, _), (wb, _, _) in zip(layers[:-1], layers[1:]):
        assert wa.shape[1] == wb.shape[0]

    tm = min(block_m, _round_up(M, 8))
    Mp = _round_up(M, tm)
    x = x.astype(jnp.float32)
    if (Mp, Kp) != (M, K):
        x = jnp.pad(x, ((0, Mp - M), (0, Kp - K)))

    in_specs = [pl.BlockSpec((tm, Kp), lambda i: (i, 0))]
    operands = [x]
    for w, b, _ in layers:
        kp, np_ = w.shape
        in_specs.append(pl.BlockSpec((kp, np_), lambda i: (0, 0)))
        in_specs.append(pl.BlockSpec((1, np_), lambda i: (0, 0)))
        operands += [w, b]
    n_out = layers[-1][0].shape[1]

    out = pl.pallas_call(
        functools.partial(_mlp_kernel, num_layers=len(layers),
                          relu_flags=tuple(bool(r) for *_, r in layers)),
        out_shape=jax.ShapeDtypeStruct((Mp, n_out), jnp.float32),
        grid=(Mp // tm,),
        in_specs=in_specs,
        out_specs=pl.BlockSpec((tm, n_out), lambda i: (i, 0)),
        compiler_params=pltpu.CompilerParams(
            dimension_semantics=("parallel",),
            vmem_limit_bytes=32 * 1024 * 1024),
    )(*operands)
    return out[:M]


# ------------- fused conv2+conv3+fc1+heads tail kernel (1 call) -------------- #

def _tail_kernel(x_ref, w2_ref, b2_ref, w3_ref, b3_ref,
                 wfc_ref, bfc_ref, wh_ref, bh_ref, o_ref, *, n_pos):
    """x_ref: (tm, n_pos*K2) conv2 im2col patches, one K2-wide block per conv2
    output position.  For each position: conv2 matmul + ReLU, then accumulate
    that position's conv3 partial sum.  Then ReLU, fc1 (+ReLU), heads.  All
    intermediates live in vregs/VMEM."""
    tm = x_ref.shape[0]
    k2 = w2_ref.shape[0]       # conv2 im2col K (= 4*4*32 = 512)
    c2p = w2_ref.shape[1]      # padded conv2 output channels (128)
    w2 = w2_ref[...]
    b2 = b2_ref[...]

    acc = jnp.zeros((tm, w3_ref.shape[1]), jnp.float32)
    for p in range(n_pos):
        xp = x_ref[:, p * k2:(p + 1) * k2]
        h = jnp.maximum(jnp.dot(xp, w2, preferred_element_type=jnp.float32) + b2, 0.0)
        w3p = w3_ref[p * c2p:(p + 1) * c2p, :]
        acc = acc + jnp.dot(h, w3p, preferred_element_type=jnp.float32)

    h = jnp.maximum(acc + b3_ref[...], 0.0)                                  # conv3+ReLU
    h = jnp.maximum(jnp.dot(h, wfc_ref[...],
                            preferred_element_type=jnp.float32) + bfc_ref[...], 0.0)  # fc1+ReLU
    o_ref[...] = (jnp.dot(h, wh_ref[...], preferred_element_type=jnp.float32)
                  + bh_ref[...]).astype(o_ref.dtype)                         # heads


def pallas_cnn_tail(patches2, prep, *, n_pos, block_m=256):
    """patches2: (N, n_pos * K2) conv2 im2col patches, NHWC position order."""
    M, ktot = patches2.shape
    tm = min(block_m, _round_up(M, 8))
    Mp = _round_up(M, tm)
    x = patches2.astype(jnp.float32)
    if Mp != M:
        x = jnp.pad(x, ((0, Mp - M), (0, 0)))

    operands = [x,
                prep["conv2_w"], prep["conv2_b"],
                prep["conv3_grp_w"], prep["conv3_b"],
                prep["fc1_w"], prep["fc1_b"],
                prep["heads_w"], prep["heads_b"]]
    in_specs = [pl.BlockSpec((tm, ktot), lambda i: (i, 0))]
    for op in operands[1:]:
        in_specs.append(pl.BlockSpec(op.shape, lambda i: (0, 0)))
    n_out = prep["heads_w"].shape[1]

    out = pl.pallas_call(
        functools.partial(_tail_kernel, n_pos=n_pos),
        out_shape=jax.ShapeDtypeStruct((Mp, n_out), jnp.float32),
        grid=(Mp // tm,),
        in_specs=in_specs,
        out_specs=pl.BlockSpec((tm, n_out), lambda i: (i, 0)),
        compiler_params=pltpu.CompilerParams(
            dimension_semantics=("parallel",),
            vmem_limit_bytes=32 * 1024 * 1024),
    )(*operands)
    return out[:M]


# --------------------------- conv via NHWC im2col --------------------------- #

def _im2col_nhwc(x, kh, kw, stride):
    """(N,H,W,C) -> (N, Ho, Wo, kh*kw, C) patches; column order (kh, kw, C)
    matches weight.transpose(2, 3, 1, 0).  No transposes of the activation."""
    n, h, w, c = x.shape
    ho = (h - kh) // stride + 1
    wo = (w - kw) // stride + 1
    cols = [x[:, i:i + stride * ho:stride, j:j + stride * wo:stride, :]
            for i in range(kh) for j in range(kw)]
    return jnp.stack(cols, axis=3), ho, wo


def _conv_layer(x_nhwc, w_pad, b_pad, kh, kw, stride, cout):
    """PyTorch-semantics valid Conv2d + ReLU on NHWC activations via the fused
    Pallas matmul kernel.  Output stays NHWC (matmul-ready for the next layer)."""
    n, _, _, c = x_nhwc.shape
    p, ho, wo = _im2col_nhwc(x_nhwc, kh, kw, stride)
    patches = p.reshape(n * ho * wo, kh * kw * c)
    y = pallas_mlp(patches, [(w_pad, b_pad, True)])
    return y[:, :cout].reshape(n, ho, wo, cout)


# ------------------------------ parameters ---------------------------------- #

def _uniform(key, shape, fan_in):
    bound = 1.0 / np.sqrt(fan_in)
    return jax.random.uniform(key, shape, jnp.float32, -bound, bound)


def init_params(key, in_channels, spatial, action_dim):
    """Torch-default-style uniform(-1/sqrt(fan_in)) init, PyTorch layouts."""
    def conv_out(s, k, st):
        return (s - k) // st + 1
    s1 = conv_out(spatial, 8, 4)
    s2 = conv_out(s1, 4, 2)
    s3 = conv_out(s2, 3, 1)
    conv_output_size = 64 * s3 * s3

    keys = jax.random.split(key, 12)
    return {
        "conv1_w": _uniform(keys[0], (32, in_channels, 8, 8), in_channels * 64),
        "conv1_b": _uniform(keys[1], (32,), in_channels * 64),
        "conv2_w": _uniform(keys[2], (64, 32, 4, 4), 32 * 16),
        "conv2_b": _uniform(keys[3], (64,), 32 * 16),
        "conv3_w": _uniform(keys[4], (64, 64, 3, 3), 64 * 9),
        "conv3_b": _uniform(keys[5], (64,), 64 * 9),
        "fc1_w": _uniform(keys[6], (512, conv_output_size), conv_output_size),
        "fc1_b": _uniform(keys[7], (512,), conv_output_size),
        "action_w": _uniform(keys[8], (action_dim, 512), 512),
        "action_b": _uniform(keys[9], (action_dim,), 512),
        "value_w": _uniform(keys[10], (1, 512), 512),
        "value_b": _uniform(keys[11], (1,), 512),
    }


def _pad_weight(wmat, b):
    K, N = wmat.shape
    Kp, Np = _round_up(K, 128), _round_up(N, 128)
    wp = jnp.pad(wmat.astype(jnp.float32), ((0, Kp - K), (0, Np - N)))
    bp = jnp.pad(b.astype(jnp.float32).reshape(1, N), ((0, 0), (0, Np - N)))
    return wp, bp


def preprocess_params(params, spatial):
    """ONE-TIME reorder + pad of every weight into the matmul-ready layout the
    Pallas kernels consume (NHWC im2col column order, (8,128)-aligned tiles).
    Nothing in here is re-done per forward step."""
    def conv_out(s, k, st):
        return (s - k) // st + 1
    s1 = conv_out(spatial, 8, 4)
    s2 = conv_out(s1, 4, 2)
    s3 = conv_out(s2, 3, 1)

    prep = {}
    for name in ("conv1", "conv2", "conv3"):
        w = params[name + "_w"]
        cout, cin, kh, kw = w.shape
        wmat = jnp.transpose(w, (2, 3, 1, 0)).reshape(kh * kw * cin, cout)
        prep[name + "_w"], prep[name + "_b"] = _pad_weight(wmat, params[name + "_b"])

    # conv3 weight regrouped per spatial position (kh,kw) with each group's
    # Cin padded to the padded conv2 output width -> used by the fused tail
    # kernel's per-position partial-sum matmuls.
    w3 = params["conv3_w"]
    cout3, cin3, kh3, kw3 = w3.shape
    wmat3 = jnp.transpose(w3, (2, 3, 1, 0)).reshape(kh3 * kw3, cin3, cout3)
    cin_pad = prep["conv2_w"].shape[1]
    cout_pad = _round_up(cout3, 128)
    w3g = jnp.pad(wmat3.astype(jnp.float32),
                  ((0, 0), (0, cin_pad - cin3), (0, cout_pad - cout3)))
    prep["conv3_grp_w"] = w3g.reshape(kh3 * kw3 * cin_pad, cout_pad)

    # fc1: permute its input columns from torch's NCHW (C,H,W) flatten order to
    # our NHWC (H,W,C) flatten order, then transpose to (K, 512).
    fc1_w = params["fc1_w"].reshape(512, 64, s3, s3)
    fc1_w = jnp.transpose(fc1_w, (0, 2, 3, 1)).reshape(512, 64 * s3 * s3).T
    prep["fc1_w"], prep["fc1_b"] = _pad_weight(fc1_w, params["fc1_b"])

    # action_head + value_head fused into one (512, action_dim + 1) matmul.
    heads_w = jnp.concatenate([params["action_w"], params["value_w"]], 0).T
    heads_b = jnp.concatenate([params["action_b"], params["value_b"]], 0)
    prep["heads_w"], prep["heads_b"] = _pad_weight(heads_w, heads_b)
    return prep


# ------------------------------- the model ---------------------------------- #

def base_cnn_forward(prep, memory_state, obses, *, action_dim):
    """Mirrors BaseCNNModel.forward (memory_state unused, as in the module)."""
    del memory_state
    # PyTorch permutes channels-last input to NCHW; we keep activations NHWC
    # end-to-end instead, so a channels-last input is used directly and an
    # NCHW input is converted to NHWC once.
    if not (obses.ndim == 4 and obses.shape[3] in (3, 6)):
        obses = jnp.transpose(obses, (0, 2, 3, 1))
    x = obses.astype(jnp.float32)

    x = _conv_layer(x, prep["conv1_w"], prep["conv1_b"], 8, 8, 4, 32)   # call 1

    n, _, _, c1 = x.shape
    p2, h2, w2 = _im2col_nhwc(x, 4, 4, 2)
    if h2 == 3 and w2 == 3:
        # conv3's 3x3 window covers the whole conv2 output -> conv2 + conv3 +
        # fc1 + both heads fuse into a single Pallas call.
        patches2 = p2.reshape(n, h2 * w2 * 4 * 4 * c1)
        out = pallas_cnn_tail(patches2, prep, n_pos=h2 * w2)             # call 2
    else:
        # TODO(synk): larger spatial sizes run conv2/conv3 as separate im2col
        # matmul calls; fc1 + both heads stay fused in one call.
        patches2 = p2.reshape(n * h2 * w2, 4 * 4 * c1)
        y = pallas_mlp(patches2, [(prep["conv2_w"], prep["conv2_b"], True)])
        x = y[:, :64].reshape(n, h2, w2, 64)
        x = _conv_layer(x, prep["conv3_w"], prep["conv3_b"], 3, 3, 1, 64)
        out = pallas_mlp(x.reshape(n, -1),
                         [(prep["fc1_w"], prep["fc1_b"], True),
                          (prep["heads_w"], prep["heads_b"], False)])
    return {"actor": out[:, :action_dim],
            "critic": out[:, action_dim:action_dim + 1]}


# ---------------------------- pure-JAX reference ----------------------------- #

def reference_forward(params, obses):
    if obses.ndim == 4 and obses.shape[3] in (3, 6):
        obses = jnp.transpose(obses, (0, 3, 1, 2))

    def conv(x, w, b, s):
        y = jax.lax.conv_general_dilated(
            x, w, (s, s), "VALID", dimension_numbers=("NCHW", "OIHW", "NCHW"))
        return y + b[None, :, None, None]

    x = jax.nn.relu(conv(obses, params["conv1_w"], params["conv1_b"], 4))
    x = jax.nn.relu(conv(x, params["conv2_w"], params["conv2_b"], 2))
    x = jax.nn.relu(conv(x, params["conv3_w"], params["conv3_b"], 1))
    x = x.reshape(x.shape[0], -1)
    x = jax.nn.relu(x @ params["fc1_w"].T + params["fc1_b"])
    return {"actor": x @ params["action_w"].T + params["action_b"],
            "critic": x @ params["value_w"].T + params["value_b"]}


# ----------------------------------- main ------------------------------------ #

if __name__ == "__main__":
    key = jax.random.PRNGKey(0)
    k_param, k_obs = jax.random.split(key)

    batch, spatial, channels, action_dim = 2, 36, 3, 6
    params = init_params(k_param, channels, spatial, action_dim)
    prep = preprocess_params(params, spatial)          # one-time weight prep

    # NHWC observation (channels-last, C == 3) so the channels-last branch of
    # the PyTorch forward is exercised.
    obses = jax.random.uniform(k_obs, (batch, spatial, spatial, channels), jnp.float32)
    memory_state = None

    forward = jax.jit(functools.partial(base_cnn_forward, action_dim=action_dim))
    out = forward(prep, memory_state, obses)
    jax.block_until_ready(out)

    ref = reference_forward(params, obses)
    np.testing.assert_allclose(np.asarray(out["actor"]), np.asarray(ref["actor"]),
                               rtol=1e-4, atol=1e-4)
    np.testing.assert_allclose(np.asarray(out["critic"]), np.asarray(ref["critic"]),
                               rtol=1e-4, atol=1e-4)

    assert out["actor"].shape == (batch, action_dim)
    assert out["critic"].shape == (batch, 1)
    print("KERNEL_OK")
</pallas_src>

<mosaic_0001>
module attributes {stable_mosaic.version = 11 : i64} {
  func.func @_mlp_kernel(%arg0: i32, %arg1: memref<128x256xf32, #tpu.memory_space<vmem>>, %arg2: memref<256x128xf32, #tpu.memory_space<vmem>>, %arg3: memref<1x128xf32, #tpu.memory_space<vmem>>, %arg4: memref<128x128xf32, #tpu.memory_space<vmem>>) attributes {dimension_semantics = [#tpu.dimension_semantics<parallel>], iteration_bounds = array<i64: 1>, scalar_prefetch = 0 : i64, scratch_operands = 0 : i64, tpu.core_type = #tpu.core_type<tc>, window_params = [{transform_indices = @transform_0, window_bounds = array<i64: 128, 256>}, {pipeline_mode = #tpu.pipeline_mode<synchronous>, transform_indices = @transform_1, window_bounds = array<i64: 256, 128>}, {pipeline_mode = #tpu.pipeline_mode<synchronous>, transform_indices = @transform_2, window_bounds = array<i64: 1, 128>}, {transform_indices = @transform_3, window_bounds = array<i64: 128, 128>}]} {
    %c0 = arith.constant 0 : index
    %c0_0 = arith.constant 0 : index
    %0 = vector.load %arg1[%c0, %c0_0] : memref<128x256xf32, #tpu.memory_space<vmem>>, vector<128x256xf32>
    %c0_1 = arith.constant 0 : index
    %c0_2 = arith.constant 0 : index
    %1 = vector.load %arg2[%c0_1, %c0_2] : memref<256x128xf32, #tpu.memory_space<vmem>>, vector<256x128xf32>
    %c0_3 = arith.constant 0 : index
    %c0_4 = arith.constant 0 : index
    %2 = vector.load %arg3[%c0_3, %c0_4] : memref<1x128xf32, #tpu.memory_space<vmem>>, vector<1x128xf32>
    %cst = arith.constant dense<0.000000e+00> : vector<128x128xf32>
    %3 = tpu.matmul %0, %1, %cst {dimension_numbers = #tpu.dot_dimension_numbers<[1], [0], [0], [1], [0, 0, 1, 1], [], []>} : vector<128x256xf32>, vector<256x128xf32>, vector<128x128xf32> -> vector<128x128xf32>
    %4 = vector.broadcast %2 : vector<1x128xf32> to vector<128x128xf32>
    %5 = arith.addf %3, %4 : vector<128x128xf32>
    %cst_5 = arith.constant 0.000000e+00 : f32
    %6 = vector.broadcast %cst_5 : f32 to vector<128x128xf32>
    %7 = arith.maximumf %5, %6 : vector<128x128xf32>
    %c0_6 = arith.constant 0 : index
    %c0_7 = arith.constant 0 : index
    %8 = vector.load %arg4[%c0_6, %c0_7] : memref<128x128xf32, #tpu.memory_space<vmem>>, vector<128x128xf32>
    tpu.vector_store %arg4[%c0_6, %c0_7], %7 {strides = array<i32>} : memref<128x128xf32, #tpu.memory_space<vmem>>, vector<128x128xf32>,
    return
  }
  func.func @transform_0(%arg0: i32) -> (i32, i32) {
    %c0_i32 = arith.constant 0 : i32
    %c0_i32_0 = arith.constant 0 : i32
    return %arg0, %c0_i32 : i32, i32
  }
  func.func @transform_1(%arg0: i32) -> (i32, i32) {
    %c0_i32 = arith.constant 0 : i32
    %c0_i32_0 = arith.constant 0 : i32
    %c0_i32_1 = arith.constant 0 : i32
    return %c0_i32, %c0_i32_0 : i32, i32
  }
  func.func @transform_2(%arg0: i32) -> (i32, i32) {
    %c0_i32 = arith.constant 0 : i32
    %c0_i32_0 = arith.constant 0 : i32
    %c0_i32_1 = arith.constant 0 : i32
    return %c0_i32, %c0_i32_0 : i32, i32
  }
  func.func @transform_3(%arg0: i32) -> (i32, i32) {
    %c0_i32 = arith.constant 0 : i32
    %c0_i32_0 = arith.constant 0 : i32
    return %arg0, %c0_i32 : i32, i32
  }
}

module attributes {stable_mosaic.version = 11 : i64} {
  func.func @_tail_kernel(%arg0: i32, %arg1: memref<8x4608xf32, #tpu.memory_space<vmem>>, %arg2: memref<512x128xf32, #tpu.memory_space<vmem>>, %arg3: memref<1x128xf32, #tpu.memory_space<vmem>>, %arg4: memref<1152x128xf32, #tpu.memory_space<vmem>>, %arg5: memref<1x128xf32, #tpu.memory_space<vmem>>, %arg6: memref<128x512xf32, #tpu.memory_space<vmem>>, %arg7: memref<1x512xf32, #tpu.memory_space<vmem>>, %arg8: memref<512x128xf32, #tpu.memory_space<vmem>>, %arg9: memref<1x128xf32, #tpu.memory_space<vmem>>, %arg10: memref<8x128xf32, #tpu.memory_space<vmem>>) attributes {dimension_semantics = [#tpu.dimension_semantics<parallel>], iteration_bounds = array<i64: 1>, scalar_prefetch = 0 : i64, scratch_operands = 0 : i64, tpu.core_type = #tpu.core_type<tc>, window_params = [{transform_indices = @transform_0, window_bounds = array<i64: 8, 4608>}, {pipeline_mode = #tpu.pipeline_mode<synchronous>, transform_indices = @transform_1, window_bounds = array<i64: 512, 128>}, {pipeline_mode = #tpu.pipeline_mode<synchronous>, transform_indices = @transform_2, window_bounds = array<i64: 1, 128>}, {pipeline_mode = #tpu.pipeline_mode<synchronous>, transform_indices = @transform_3, window_bounds = array<i64: 1152, 128>}, {pipeline_mode = #tpu.pipeline_mode<synchronous>, transform_indices = @transform_4, window_bounds = array<i64: 1, 128>}, {pipeline_mode = #tpu.pipeline_mode<synchronous>, transform_indices = @transform_5, window_bounds = array<i64: 128, 512>}, {pipeline_mode = #tpu.pipeline_mode<synchronous>, transform_indices = @transform_6, window_bounds = array<i64: 1, 512>}, {pipeline_mode = #tpu.pipeline_mode<synchronous>, transform_indices = @transform_7, window_bounds = array<i64: 512, 128>}, {pipeline_mode = #tpu.pipeline_mode<synchronous>, transform_indices = @transform_8, window_bounds = array<i64: 1, 128>}, {transform_indices = @transform_9, window_bounds = array<i64: 8, 128>}]} {
    %c0 = arith.constant 0 : index
    %c0_0 = arith.constant 0 : index
    %0 = vector.load %arg2[%c0, %c0_0] : memref<512x128xf32, #tpu.memory_space<vmem>>, vector<512x128xf32>
    %c0_1 = arith.constant 0 : index
    %c0_2 = arith.constant 0 : index
    %1 = vector.load %arg3[%c0_1, %c0_2] : memref<1x128xf32, #tpu.memory_space<vmem>>, vector<1x128xf32>
    %cst = arith.constant 0.000000e+00 : f32
    %2 = vector.broadcast %cst : f32 to vector<8x128xf32>
    %c0_3 = arith.constant 0 : index
    %c0_4 = arith.constant 0 : index
    %3 = vector.load %arg1[%c0_3, %c0_4] : memref<8x4608xf32, #tpu.memory_space<vmem>>, vector<8x512xf32>
    %cst_5 = arith.constant dense<0.000000e+00> : vector<8x128xf32>
    %4 = tpu.matmul %3, %0, %cst_5 {dimension_numbers = #tpu.dot_dimension_numbers<[1], [0], [0], [1], [0, 0, 1, 1], [], []>} : vector<8x512xf32>, vector<512x128xf32>, vector<8x128xf32> -> vector<8x128xf32>
    %5 = vector.broadcast %1 : vector<1x128xf32> to vector<8x128xf32>
    %6 = arith.addf %4, %5 : vector<8x128xf32>
    %cst_6 = arith.constant 0.000000e+00 : f32
    %7 = vector.broadcast %cst_6 : f32 to vector<8x128xf32>
    %8 = arith.maximumf %6, %7 : vector<8x128xf32>
    %c0_7 = arith.constant 0 : index
    %c0_8 = arith.constant 0 : index
    %9 = vector.load %arg4[%c0_7, %c0_8] : memref<1152x128xf32, #tpu.memory_space<vmem>>, vector<128x128xf32>
    %cst_9 = arith.constant dense<0.000000e+00> : vector<8x128xf32>
    %10 = tpu.matmul %8, %9, %cst_9 {dimension_numbers = #tpu.dot_dimension_numbers<[1], [0], [0], [1], [0, 0, 1, 1], [], []>} : vector<8x128xf32>, vector<128x128xf32>, vector<8x128xf32> -> vector<8x128xf32>
    %11 = arith.addf %2, %10 : vector<8x128xf32>
    %c0_10 = arith.constant 0 : index
    %c512 = arith.constant 512 : index
    %12 = vector.load %arg1[%c0_10, %c512] : memref<8x4608xf32, #tpu.memory_space<vmem>>, vector<8x512xf32>
    %cst_11 = arith.constant dense<0.000000e+00> : vector<8x128xf32>
    %13 = tpu.matmul %12, %0, %cst_11 {dimension_numbers = #tpu.dot_dimension_numbers<[1], [0], [0], [1], [0, 0, 1, 1], [], []>} : vector<8x512xf32>, vector<512x128xf32>, vector<8x128xf32> -> vector<8x128xf32>
    %14 = vector.broadcast %1 : vector<1x128xf32> to vector<8x128xf32>
    %15 = arith.addf %13, %14 : vector<8x128xf32>
    %cst_12 = arith.constant 0.000000e+00 : f32
    %16 = vector.broadcast %cst_12 : f32 to vector<8x128xf32>
    %17 = arith.maximumf %15, %16 : vector<8x128xf32>
    %c128 = arith.constant 128 : index
    %c0_13 = arith.constant 0 : index
    %18 = vector.load %arg4[%c128, %c0_13] : memref<1152x128xf32, #tpu.memory_space<vmem>>, vector<128x128xf32>
    %cst_14 = arith.constant dense<0.000000e+00> : vector<8x128xf32>
    %19 = tpu.matmul %17, %18, %cst_14 {dimension_numbers = #tpu.dot_dimension_numbers<[1], [0], [0], [1], [0, 0, 1, 1], [], []>} : vector<8x128xf32>, vector<128x128xf32>, vector<8x128xf32> -> vector<8x128xf32>
    %20 = arith.addf %11, %19 : vector<8x128xf32>
    %c0_15 = arith.constant 0 : index
    %c1024 = arith.constant 1024 : index
    %21 = vector.load %arg1[%c0_15, %c1024] : memref<8x4608xf32, #tpu.memory_space<vmem>>, vector<8x512xf32>
    %cst_16 = arith.constant dense<0.000000e+00> : vector<8x128xf32>
    %22 = tpu.matmul %21, %0, %cst_16 {dimension_numbers = #tpu.dot_dimension_numbers<[1], [0], [0], [1], [0, 0, 1, 1], [], []>} : vector<8x512xf32>, vector<512x128xf32>, vector<8x128xf32> -> vector<8x128xf32>
    %23 = vector.broadcast %1 : vector<1x128xf32> to vector<8x128xf32>
    %24 = arith.addf %22, %23 : vector<8x128xf32>
    %cst_17 = arith.constant 0.000000e+00 : f32
    %25 = vector.broadcast %cst_17 : f32 to vector<8x128xf32>
    %26 = arith.maximumf %24, %25 : vector<8x128xf32>
    %c256 = arith.constant 256 : index
    %c0_18 = arith.constant 0 : index
    %27 = vector.load %arg4[%c256, %c0_18] : memref<1152x128xf32, #tpu.memory_space<vmem>>, vector<128x128xf32>
    %cst_19 = arith.constant dense<0.000000e+00> : vector<8x128xf32>
    %28 = tpu.matmul %26, %27, %cst_19 {dimension_numbers = #tpu.dot_dimension_numbers<[1], [0], [0], [1], [0, 0, 1, 1], [], []>} : vector<8x128xf32>, vector<128x128xf32>, vector<8x128xf32> -> vector<8x128xf32>
    %29 = arith.addf %20, %28 : vector<8x128xf32>
    %c0_20 = arith.constant 0 : index
    %c1536 = arith.constant 1536 : index
    %30 = vector.load %arg1[%c0_20, %c1536] : memref<8x4608xf32, #tpu.memory_space<vmem>>, vector<8x512xf32>
    %cst_21 = arith.constant dense<0.000000e+00> : vector<8x128xf32>
    %31 = tpu.matmul %30, %0, %cst_21 {dimension_numbers = #tpu.dot_dimension_numbers<[1], [0], [0], [1], [0, 0, 1, 1], [], []>} : vector<8x512xf32>, vector<512x128xf32>, vector<8x128xf32> -> vector<8x128xf32>
    %32 = vector.broadcast %1 : vector<1x128xf32> to vector<8x128xf32>
    %33 = arith.addf %31, %32 : vector<8x128xf32>
    %cst_22 = arith.constant 0.000000e+00 : f32
    %34 = vector.broadcast %cst_22 : f32 to vector<8x128xf32>
    %35 = arith.maximumf %33, %34 : vector<8x128xf32>
    %c384 = arith.constant 384 : index
    %c0_23 = arith.constant 0 : index
    %36 = vector.load %arg4[%c384, %c0_23] : memref<1152x128xf32, #tpu.memory_space<vmem>>, vector<128x128xf32>
    %cst_24 = arith.constant dense<0.000000e+00> : vector<8x128xf32>
    %37 = tpu.matmul %35, %36, %cst_24 {dimension_numbers = #tpu.dot_dimension_numbers<[1], [0], [0], [1], [0, 0, 1, 1], [], []>} : vector<8x128xf32>, vector<128x128xf32>, vector<8x128xf32> -> vector<8x128xf32>
    %38 = arith.addf %29, %37 : vector<8x128xf32>
    %c0_25 = arith.constant 0 : index
    %c2048 = arith.constant 2048 : index
    %39 = vector.load %arg1[%c0_25, %c2048] : memref<8x4608xf32, #tpu.memory_space<vmem>>, vector<8x512xf32>
    %cst_26 = arith.constant dense<0.000000e+00> : vector<8x128xf32>
    %40 = tpu.matmul %39, %0, %cst_26 {dimension_numbers = #tpu.dot_dimension_numbers<[1], [0], [0], [1], [0, 0, 1, 1], [], []>} : vector<8x512xf32>, vector<512x128xf32>, vector<8x128xf32> -> vector<8x128xf32>
    %41 = vector.broadcast %1 : vector<1x128xf32> to vector<8x128xf32>
    %42 = arith.addf %40, %41 : vector<8x128xf32>
    %cst_27 = arith.constant 0.000000e+00 : f32
    %43 = vector.broadcast %cst_27 : f32 to vector<8x128xf32>
    %44 = arith.maximumf %42, %43 : vector<8x128xf32>
    %c512_28 = arith.constant 512 : index
    %c0_29 = arith.constant 0 : index
    %45 = vector.load %arg4[%c512_28, %c0_29] : memref<1152x128xf32, #tpu.memory_space<vmem>>, vector<128x128xf32>
    %cst_30 = arith.constant dense<0.000000e+00> : vector<8x128xf32>
    %46 = tpu.matmul %44, %45, %cst_30 {dimension_numbers = #tpu.dot_dimension_numbers<[1], [0], [0], [1], [0, 0, 1, 1], [], []>} : vector<8x128xf32>, vector<128x128xf32>, vector<8x128xf32> -> vector<8x128xf32>
    %47 = arith.addf %38, %46 : vector<8x128xf32>
    %c0_31 = arith.constant 0 : index
    %c2560 = arith.constant 2560 : index
    %48 = vector.load %arg1[%c0_31, %c2560] : memref<8x4608xf32, #tpu.memory_space<vmem>>, vector<8x512xf32>
    %cst_32 = arith.constant dense<0.000000e+00> : vector<8x128xf32>
    %49 = tpu.matmul %48, %0, %cst_32 {dimension_numbers = #tpu.dot_dimension_numbers<[1], [0], [0], [1], [0, 0, 1, 1], [], []>} : vector<8x512xf32>, vector<512x128xf32>, vector<8x128xf32> -> vector<8x128xf32>
    %50 = vector.broadcast %1 : vector<1x128xf32> to vector<8x128xf32>
    %51 = arith.addf %49, %50 : vector<8x128xf32>
    %cst_33 = arith.constant 0.000000e+00 : f32
    %52 = vector.broadcast %cst_33 : f32 to vector<8x128xf32>
    %53 = arith.maximumf %51, %52 : vector<8x128xf32>
    %c640 = arith.constant 640 : index
    %c0_34 = arith.constant 0 : index
    %54 = vector.load %arg4[%c640, %c0_34] : memref<1152x128xf32, #tpu.memory_space<vmem>>, vector<128x128xf32>
    %cst_35 = arith.constant dense<0.000000e+00> : vector<8x128xf32>
    %55 = tpu.matmul %53, %54, %cst_35 {dimension_numbers = #tpu.dot_dimension_numbers<[1], [0], [0], [1], [0, 0, 1, 1], [], []>} : vector<8x128xf32>, vector<128x128xf32>, vector<8x128xf32> -> vector<8x128xf32>
    %56 = arith.addf %47, %55 : vector<8x128xf32>
    %c0_36 = arith.constant 0 : index
    %c3072 = arith.constant 3072 : index
    %57 = vector.load %arg1[%c0_36, %c3072] : memref<8x4608xf32, #tpu.memory_space<vmem>>, vector<8x512xf32>
    %cst_37 = arith.constant dense<0.000000e+00> : vector<8x128xf32>
    %58 = tpu.matmul %57, %0, %cst_37 {dimension_numbers = #tpu.dot_dimension_numbers<[1], [0], [0], [1], [0, 0, 1, 1], [], []>} : vector<8x512xf32>, vector<512x128xf32>, vector<8x128xf32> -> vector<8x128xf32>
    %59 = vector.broadcast %1 : vector<1x128xf32> to vector<8x128xf32>
    %60 = arith.addf %58, %59 : vector<8x128xf32>
    %cst_38 = arith.constant 0.000000e+00 : f32
    %61 = vector.broadcast %cst_38 : f32 to vector<8x128xf32>
    %62 = arith.maximumf %60, %61 : vector<8x128xf32>
    %c768 = arith.constant 768 : index
    %c0_39 = arith.constant 0 : index
    %63 = vector.load %arg4[%c768, %c0_39] : memref<1152x128xf32, #tpu.memory_space<vmem>>, vector<128x128xf32>
    %cst_40 = arith.constant dense<0.000000e+00> : vector<8x128xf32>
    %64 = tpu.matmul %62, %63, %cst_40 {dimension_numbers = #tpu.dot_dimension_numbers<[1], [0], [0], [1], [0, 0, 1, 1], [], []>} : vector<8x128xf32>, vector<128x128xf32>, vector<8x128xf32> -> vector<8x128xf32>
    %65 = arith.addf %56, %64 : vector<8x128xf32>
    %c0_41 = arith.constant 0 : index
    %c3584 = arith.constant 3584 : index
    %66 = vector.load %arg1[%c0_41, %c3584] : memref<8x4608xf32, #tpu.memory_space<vmem>>, vector<8x512xf32>
    %cst_42 = arith.constant dense<0.000000e+00> : vector<8x128xf32>
    %67 = tpu.matmul %66, %0, %cst_42 {dimension_numbers = #tpu.dot_dimension_numbers<[1], [0], [0], [1], [0, 0, 1, 1], [], []>} : vector<8x512xf32>, vector<512x128xf32>, vector<8x128xf32> -> vector<8x128xf32>
    %68 = vector.broadcast %1 : vector<1x128xf32> to vector<8x128xf32>
    %69 = arith.addf %67, %68 : vector<8x128xf32>
    %cst_43 = arith.constant 0.000000e+00 : f32
    %70 = vector.broadcast %cst_43 : f32 to vector<8x128xf32>
    %71 = arith.maximumf %69, %70 : vector<8x128xf32>
    %c896 = arith.constant 896 : index
    %c0_44 = arith.constant 0 : index
    %72 = vector.load %arg4[%c896, %c0_44] : memref<1152x128xf32, #tpu.memory_space<vmem>>, vector<128x128xf32>
    %cst_45 = arith.constant dense<0.000000e+00> : vector<8x128xf32>
    %73 = tpu.matmul %71, %72, %cst_45 {dimension_numbers = #tpu.dot_dimension_numbers<[1], [0], [0], [1], [0, 0, 1, 1], [], []>} : vector<8x128xf32>, vector<128x128xf32>, vector<8x128xf32> -> vector<8x128xf32>
    %74 = arith.addf %65, %73 : vector<8x128xf32>
    %c0_46 = arith.constant 0 : index
    %c4096 = arith.constant 4096 : index
    %75 = vector.load %arg1[%c0_46, %c4096] : memref<8x4608xf32, #tpu.memory_space<vmem>>, vector<8x512xf32>
    %cst_47 = arith.constant dense<0.000000e+00> : vector<8x128xf32>
    %76 = tpu.matmul %75, %0, %cst_47 {dimension_numbers = #tpu.dot_dimension_numbers<[1], [0], [0], [1], [0, 0, 1, 1], [], []>} : vector<8x512xf32>, vector<512x128xf32>, vector<8x128xf32> -> vector<8x128xf32>
    %77 = vector.broadcast %1 : vector<1x128xf32> to vector<8x128xf32>
    %78 = arith.addf %76, %77 : vector<8x128xf32>
    %cst_48 = arith.constant 0.000000e+00 : f32
    %79 = vector.broadcast %cst_48 : f32 to vector<8x128xf32>
    %80 = arith.maximumf %78, %79 : vector<8x128xf32>
    %c1024_49 = arith.constant 1024 : index
    %c0_50 = arith.constant 0 : index
    %81 = vector.load %arg4[%c1024_49, %c0_50] : memref<1152x128xf32, #tpu.memory_space<vmem>>, vector<128x128xf32>
    %cst_51 = arith.constant dense<0.000000e+00> : vector<8x128xf32>
    %82 = tpu.matmul %80, %81, %cst_51 {dimension_numbers = #tpu.dot_dimension_numbers<[1], [0], [0], [1], [0, 0, 1, 1], [], []>} : vector<8x128xf32>, vector<128x128xf32>, vector<8x128xf32> -> vector<8x128xf32>
    %83 = arith.addf %74, %82 : vector<8x128xf32>
    %c0_52 = arith.constant 0 : index
    %c0_53 = arith.constant 0 : index
    %84 = vector.load %arg5[%c0_52, %c0_53] : memref<1x128xf32, #tpu.memory_space<vmem>>, vector<1x128xf32>
    %85 = vector.broadcast %84 : vector<1x128xf32> to vector<8x128xf32>
    %86 = arith.addf %83, %85 : vector<8x128xf32>
    %cst_54 = arith.constant 0.000000e+00 : f32
    %87 = vector.broadcast %cst_54 : f32 to vector<8x128xf32>
    %88 = arith.maximumf %86, %87 : vector<8x128xf32>
    %c0_55 = arith.constant 0 : index
    %c0_56 = arith.constant 0 : index
    %89 = vector.load %arg6[%c0_55, %c0_56] : memref<128x512xf32, #tpu.memory_space<vmem>>, vector<128x512xf32>
    %cst_57 = arith.constant dense<0.000000e+00> : vector<8x512xf32>
    %90 = tpu.matmul %88, %89, %cst_57 {dimension_numbers = #tpu.dot_dimension_numbers<[1], [0], [0], [1], [0, 0, 1, 1], [], []>} : vector<8x128xf32>, vector<128x512xf32>, vector<8x512xf32> -> vector<8x512xf32>
    %c0_58 = arith.constant 0 : index
    %c0_59 = arith.constant 0 : index
    %91 = vector.load %arg7[%c0_58, %c0_59] : memref<1x512xf32, #tpu.memory_space<vmem>>, vector<1x512xf32>
    %92 = vector.broadcast %91 : vector<1x512xf32> to vector<8x512xf32>
    %93 = arith.addf %90, %92 : vector<8x512xf32>
    %cst_60 = arith.constant 0.000000e+00 : f32
    %94 = vector.broadcast %cst_60 : f32 to vector<8x512xf32>
    %95 = arith.maximumf %93, %94 : vector<8x512xf32>
    %c0_61 = arith.constant 0 : index
    %c0_62 = arith.constant 0 : index
    %96 = vector.load %arg8[%c0_61, %c0_62] : memref<512x128xf32, #tpu.memory_space<vmem>>, vector<512x128xf32>
    %cst_63 = arith.constant dense<0.000000e+00> : vector<8x128xf32>
    %97 = tpu.matmul %95, %96, %cst_63 {dimension_numbers = #tpu.dot_dimension_numbers<[1], [0], [0], [1], [0, 0, 1, 1], [], []>} : vector<8x512xf32>, vector<512x128xf32>, vector<8x128xf32> -> vector<8x128xf32>
    %c0_64 = arith.constant 0 : index
    %c0_65 = arith.constant 0 : index
    %98 = vector.load %arg9[%c0_64, %c0_65] : memref<1x128xf32, #tpu.memory_space<vmem>>, vector<1x128xf32>
    %99 = vector.broadcast %98 : vector<1x128xf32> to vector<8x128xf32>
    %100 = arith.addf %97, %99 : vector<8x128xf32>
    %c0_66 = arith.constant 0 : index
    %c0_67 = arith.constant 0 : index
    %101 = vector.load %arg10[%c0_66, %c0_67] : memref<8x128xf32, #tpu.memory_space<vmem>>, vector<8x128xf32>
    tpu.vector_store %arg10[%c0_66, %c0_67], %100 {strides = array<i32>} : memref<8x128xf32, #tpu.memory_space<vmem>>, vector<8x128xf32>,
    return
  }
  func.func @transform_0(%arg0: i32) -> (i32, i32) {
    %c0_i32 = arith.constant 0 : i32
    %c0_i32_0 = arith.constant 0 : i32
    return %arg0, %c0_i32 : i32, i32
  }
  func.func @transform_1(%arg0: i32) -> (i32, i32) {
    %c0_i32 = arith.constant 0 : i32
    %c0_i32_0 = arith.constant 0 : i32
    %c0_i32_1 = arith.constant 0 : i32
    return %c0_i32, %c0_i32_0 : i32, i32
  }
  func.func @transform_2(%arg0: i32) -> (i32, i32) {
    %c0_i32 = arith.constant 0 : i32
    %c0_i32_0 = arith.constant 0 : i32
    %c0_i32_1 = arith.constant 0 : i32
    return %c0_i32, %c0_i32_0 : i32, i32
  }
  func.func @transform_3(%arg0: i32) -> (i32, i32) {
    %c0_i32 = arith.constant 0 : i32
    %c0_i32_0 = arith.constant 0 : i32
    %c0_i32_1 = arith.constant 0 : i32
    return %c0_i32, %c0_i32_0 : i32, i32
  }
  func.func @transform_4(%arg0: i32) -> (i32, i32) {
    %c0_i32 = arith.constant 0 : i32
    %c0_i32_0 = arith.constant 0 : i32
    %c0_i32_1 = arith.constant 0 : i32
    return %c0_i32, %c0_i32_0 : i32, i32
  }
  func.func @transform_5(%arg0: i32) -> (i32, i32) {
    %c0_i32 = arith.constant 0 : i32
    %c0_i32_0 = arith.constant 0 : i32
    %c0_i32_1 = arith.constant 0 : i32
    return %c0_i32, %c0_i32_0 : i32, i32
  }
  func.func @transform_6(%arg0: i32) -> (i32, i32) {
    %c0_i32 = arith.constant 0 : i32
    %c0_i32_0 = arith.constant 0 : i32
    %c0_i32_1 = arith.constant 0 : i32
    return %c0_i32, %c0_i32_0 : i32, i32
  }
  func.func @transform_7(%arg0: i32) -> (i32, i32) {
    %c0_i32 = arith.constant 0 : i32
    %c0_i32_0 = arith.constant 0 : i32
    %c0_i32_1 = arith.constant 0 : i32
    return %c0_i32, %c0_i32_0 : i32, i32
  }
  func.func @transform_8(%arg0: i32) -> (i32, i32) {
    %c0_i32 = arith.constant 0 : i32
    %c0_i32_0 = arith.constant 0 : i32
    %c0_i32_1 = arith.constant 0 : i32
    return %c0_i32, %c0_i32_0 : i32, i32
  }
  func.func @transform_9(%arg0: i32) -> (i32, i32) {
    %c0_i32 = arith.constant 0 : i32
    %c0_i32_0 = arith.constant 0 : i32
    return %arg0, %c0_i32 : i32, i32
  }
}

</mosaic_0001>

<bundles_post_ra>
// kernel: base_cnn_forward.2
= control target key start
LH: loop header
LB: loop body
LE: loop exit
PB: predicated region body
PF: predicated region fallthrough
CT: control target
= control target key end

     0   :  { %s676_s1 = inlined_call_operand.vmem [shape: f32[256,128], index: 1, kind: input, shape index: {}]   ;;  %s677_s0 = inlined_call_operand.vmem [shape: f32[128,256], index: 0, kind: input, shape index: {}]   ;;  %s678_s2 = inlined_call_operand.vmem [shape: f32[1,128], index: 2, kind: input, shape index: {}]   ;;  %s679_s3 = inlined_call_operand.vmem [shape: f32[128,128], index: 3, kind: output, shape index: {}]  }
   0x1   :  { %v62_v0 = vld [vmem:[%s676_s1 + $0x80] sm:$0xff]  ;;  %v63_v1 = vld [vmem:[%s676_s1 + $0x88] sm:$0xff]  ;;  %v64_v5 = vld [vmem:[%s676_s1 + $0x90] sm:$0xff] }
   0x2   :  { %v46_v2 = vld [vmem:[%s676_s1] sm:$0xff]  ;;  %v347_v3 = vpack.c.bf16 %v63_v1, %v62_v0  ;;  %v47_v4 = vld [vmem:[%s676_s1 + $0x8] sm:$0xff]  ;;  %v65_v6 = vld [vmem:[%s676_s1 + $0x98] sm:$0xff] }
   0x3   :  { %v349_v7 = vpack.c.bf16 %v47_v4, %v46_v2  ;;  %v351_v8 = vpack.c.bf16 %v65_v6, %v64_v5  ;;  %v48_v9 = vld [vmem:[%s676_s1 + $0x10] sm:$0xff]  ;;  %v49_v10 = vld [vmem:[%s676_s1 + $0x18] sm:$0xff]  ;;  %v66_v11 = vld [vmem:[%s676_s1 + $0xa0] sm:$0xff] }
   0x4   :  { %348 = vmatprep.subr.bf16.mxu0 %v347_v3  ;;  %379 = vmatprep.subr.bf16.mxu1 %v347_v3  ;;  %v67_v12 = vld [vmem:[%s676_s1 + $0xa8] sm:$0xff]  ;;  %v353_v13 = vpack.c.bf16 %v49_v10, %v48_v9  ;;  %v50_v15 = vld [vmem:[%s676_s1 + $0x20] sm:$0xff]  ;;  %v68_v17 = vld [vmem:[%s676_s1 + $0xb0] sm:$0xff] }
   0x5   :  { %350 = vmatpush3.bf16.msra.mxu0 %v349_v7  ;;  %387 = vmatpush3.bf16.msra.mxu1 %v349_v7  ;;  %v355_v14 = vpack.c.bf16 %v67_v12, %v66_v11  ;;  %v51_v16 = vld [vmem:[%s676_s1 + $0x28] sm:$0xff]  ;;  %v69_v18 = vld [vmem:[%s676_s1 + $0xb8] sm:$0xff]  ;;  %v52_v21 = vld [vmem:[%s676_s1 + $0x30] sm:$0xff] }
   0x6   :  { %352 = vmatprep.subr.bf16.mxu0 %v351_v8  ;;  %380 = vmatprep.subr.bf16.mxu1 %v351_v8  ;;  %v357_v19 = vpack.c.bf16 %v51_v16, %v50_v15  ;;  %v359_v20 = vpack.c.bf16 %v69_v18, %v68_v17  ;;  %v53_v22 = vld [vmem:[%s676_s1 + $0x38] sm:$0xff]  ;;  %v70_v23 = vld [vmem:[%s676_s1 + $0xc0] sm:$0xff]  ;;  %v71_v24 = vld [vmem:[%s676_s1 + $0xc8] sm:$0xff] }
   0x7   :  { %v15_v25 = vld [vmem:[%s677_s0 + $0x8] sm:$0xff]  ;;  %v361_v27 = vpack.c.bf16 %v53_v22, %v52_v21  ;;  %v363_v28 = vpack.c.bf16 %v71_v24, %v70_v23  ;;  %v54_v29 = vld [vmem:[%s676_s1 + $0x40] sm:$0xff]  ;;  %v72_v31 = vld [vmem:[%s676_s1 + $0xd0] sm:$0xff] }
   0x8   :  { %149 = vmatprep.mubr.f32.mxu0 %v15_v25  ;;  %v31_v26 = vld [vmem:[%s677_s0 + $0x88] sm:$0xff]  ;;  %v73_v32 = vld [vmem:[%s676_s1 + $0xd8] sm:$0xff]  ;;  %v56_v35 = vld [vmem:[%s676_s1 + $0x50] sm:$0xff] }
   0x9   :  { %354 = vmatpush3.bf16.msra.mxu0 %v353_v13  ;;  %388 = vmatpush3.bf16.msra.mxu1 %v353_v13  ;;  %v55_v30 = vld [vmem:[%s676_s1 + $0x48] sm:$0xff]  ;;  %v367_v34 = vpack.c.bf16 %v73_v32, %v72_v31  ;;  %v57_v36 = vld [vmem:[%s676_s1 + $0x58] sm:$0xff]  ;;  %v74_v37 = vld [vmem:[%s676_s1 + $0xe0] sm:$0xff] }
   0xa   :  { %356 = vmatprep.subr.bf16.mxu0 %v355_v14  ;;  %381 = vmatprep.subr.bf16.mxu1 %v355_v14  ;;  %v365_v33 = vpack.c.bf16 %v55_v30, %v54_v29  ;;  %v75_v38 = vld [vmem:[%s676_s1 + $0xe8] sm:$0xff]  ;;  %v369_v39 = vpack.c.bf16 %v57_v36, %v56_v35  ;;  %v58_v41 = vld [vmem:[%s676_s1 + $0x60] sm:$0xff]  ;;  %v76_v43 = vld [vmem:[%s676_s1 + $0xf0] sm:$0xff] }
   0xb   :  { %189 = vmatprep.mubr.f32.mxu1 %v31_v26  ;;  %v371_v40 = vpack.c.bf16 %v75_v38, %v74_v37  ;;  %v59_v42 = vld [vmem:[%s676_s1 + $0x68] sm:$0xff]  ;;  %v77_v44 = vld [vmem:[%s676_s1 + $0xf8] sm:$0xff]  ;;  %v60_v47 = vld [vmem:[%s676_s1 + $0x70] sm:$0xff] }
   0xc   :  { %v373_v45 = vpack.c.bf16 %v59_v42, %v58_v41  ;;  %v375_v46 = vpack.c.bf16 %v77_v44, %v76_v43  ;;  %v61_v48 = vld [vmem:[%s676_s1 + $0x78] sm:$0xff]  ;;  %v14_v50 = vld [vmem:[%s677_s0] sm:$0xff]  ;;  %v16_v54 = vld [vmem:[%s677_s0 + $0x10] sm:$0xff] }
   0xd   :  { %358 = vmatpush3.bf16.msra.mxu0 %v357_v19  ;;  %389 = vmatpush3.bf16.msra.mxu1 %v357_v19  ;;  %v377_v49 = vpack.c.bf16 %v61_v48, %v60_v47  ;;  %v30_v51 = vld [vmem:[%s677_s0 + $0x80] sm:$0xff]  ;;  %v17_v52 = vld [vmem:[%s677_s0 + $0x18] sm:$0xff]  ;;  %v32_v55 = vld [vmem:[%s677_s0 + $0x90] sm:$0xff] }
   0xe   :  { %360 = vmatprep.subr.bf16.mxu0 %v359_v20  ;;  %382 = vmatprep.subr.bf16.mxu1 %v359_v20  ;;  %v33_v53 = vld [vmem:[%s677_s0 + $0x98] sm:$0xff]  ;;  %v19_v56 = vld [vmem:[%s677_s0 + $0x28] sm:$0xff]  ;;  %v18_v58 = vld [vmem:[%s677_s0 + $0x20] sm:$0xff] }
   0xf   :  { %v35_v57 = vld [vmem:[%s677_s0 + $0xa8] sm:$0xff]  ;;  %v34_v59 = vld [vmem:[%s677_s0 + $0xa0] sm:$0xff]  ;;  %v21_v60 = vld [vmem:[%s677_s0 + $0x38] sm:$0xff] }
  0x10   :  { %v37_v61 = vld [vmem:[%s677_s0 + $0xb8] sm:$0xff]  ;;  %v20_v62 = vld [vmem:[%s677_s0 + $0x30] sm:$0xff]  ;;  %v23_v0 = vld [vmem:[%s677_s0 + $0x48] sm:$0xff] }
  0x11   :  { %362 = vmatpush3.bf16.msra.mxu0 %v361_v27  ;;  %390 = vmatpush3.bf16.msra.mxu1 %v361_v27  ;;  %v36_v63 = vld [vmem:[%s677_s0 + $0xb0] sm:$0xff]  ;;  %v39_v1 = vld [vmem:[%s677_s0 + $0xc8] sm:$0xff]  ;;  %v22_v2 = vld [vmem:[%s677_s0 + $0x40] sm:$0xff] }
  0x12   :  { %364 = vmatprep.subr.bf16.mxu0 %v363_v28  ;;  %383 = vmatprep.subr.bf16.mxu1 %v363_v28  ;;  %v38_v3 = vld [vmem:[%s677_s0 + $0xc0] sm:$0xff]  ;;  %v25_v4 = vld [vmem:[%s677_s0 + $0x58] sm:$0xff]  ;;  %v24_v6 = vld [vmem:[%s677_s0 + $0x50] sm:$0xff] }
  0x13   :  { %v41_v5 = vld [vmem:[%s677_s0 + $0xd8] sm:$0xff]  ;;  %v40_v7 = vld [vmem:[%s677_s0 + $0xd0] sm:$0xff]  ;;  %v27_v8 = vld [vmem:[%s677_s0 + $0x68] sm:$0xff] }
  0x14   :  { %v43_v9 = vld [vmem:[%s677_s0 + $0xe8] sm:$0xff]  ;;  %v26_v10 = vld [vmem:[%s677_s0 + $0x60] sm:$0xff]  ;;  %v29_v12 = vld [vmem:[%s677_s0 + $0x78] sm:$0xff] }
  0x15   :  { %366 = vmatpush3.bf16.msra.mxu0 %v365_v33  ;;  %391 = vmatpush3.bf16.msra.mxu1 %v365_v33  ;;  %v42_v11 = vld [vmem:[%s677_s0 + $0xe0] sm:$0xff]  ;;  %v45_v13 = vld [vmem:[%s677_s0 + $0xf8] sm:$0xff]  ;;  %v28_v14 = vld [vmem:[%s677_s0 + $0x70] sm:$0xff] }
  0x16   :  { %368 = vmatprep.subr.bf16.mxu0 %v367_v34  ;;  %384 = vmatprep.subr.bf16.mxu1 %v367_v34  ;;  %v44_v15 = vld [vmem:[%s677_s0 + $0xf0] sm:$0xff]  ;;  %v610_v18 = vld [vmem:[%s678_s2] ss:$0 sm:$0xff] }
  0x19   :  { %370 = vmatpush3.bf16.msra.mxu0 %v369_v39  ;;  %392 = vmatpush3.bf16.msra.mxu1 %v369_v39 }
  0x1a   :  { %372 = vmatprep.subr.bf16.mxu0 %v371_v40  ;;  %385 = vmatprep.subr.bf16.mxu1 %v371_v40 }
  0x1d   :  { %374 = vmatpush3.bf16.msra.mxu0 %v373_v45  ;;  %393 = vmatpush3.bf16.msra.mxu1 %v373_v45 }
  0x1e   :  { %376 = vmatprep.subr.bf16.mxu0 %v375_v46  ;;  %386 = vmatprep.subr.bf16.mxu1 %v375_v46 }
  0x21   :  { %378 = vmatpush3.bf16.msra.mxu0 %v377_v49  ;;  %394 = vmatpush3.bf16.msra.mxu1 %v377_v49 }
  0x24   :  { %150 = vmatmul.mubr.f32.vlgmr.msra.gmra.mrb[0].mxu0 %v14_v50  ;;  %190 = vmatmul.mubr.f32.vlgmr.msra.gmra.mrb[0].mxu1 %v30_v51 }
  0x25   :  { %154 = vmatprep.mubr.f32.mxu0 %v17_v52  ;;  %194 = vmatprep.mubr.f32.mxu1 %v33_v53 }
  0x28   :  { %155 = vmatmul.mubr.f32.gmra.mrb[2].mxu0 %v16_v54  ;;  %195 = vmatmul.mubr.f32.gmra.mrb[2].mxu1 %v32_v55 }
  0x29   :  { %159 = vmatprep.mubr.f32.mxu0 %v19_v56  ;;  %199 = vmatprep.mubr.f32.mxu1 %v35_v57 }
  0x2c   :  { %160 = vmatmul.mubr.f32.gmra.mrb[4].mxu0 %v18_v58  ;;  %200 = vmatmul.mubr.f32.gmra.mrb[4].mxu1 %v34_v59 }
  0x2d   :  { %164 = vmatprep.mubr.f32.mxu0 %v21_v60  ;;  %204 = vmatprep.mubr.f32.mxu1 %v37_v61 }
  0x30   :  { %165 = vmatmul.mubr.f32.gmra.mrb[6].mxu0 %v20_v62  ;;  %205 = vmatmul.mubr.f32.gmra.mrb[6].mxu1 %v36_v63 }
  0x31   :  { %169 = vmatprep.mubr.f32.mxu0 %v23_v0  ;;  %209 = vmatprep.mubr.f32.mxu1 %v39_v1 }
  0x34   :  { %170 = vmatmul.mubr.f32.gmra.mrb[8].mxu0 %v22_v2  ;;  %210 = vmatmul.mubr.f32.gmra.mrb[8].mxu1 %v38_v3 }
  0x35   :  { %174 = vmatprep.mubr.f32.mxu0 %v25_v4  ;;  %214 = vmatprep.mubr.f32.mxu1 %v41_v5 }
  0x38   :  { %175 = vmatmul.mubr.f32.gmra.mrb[10].mxu0 %v24_v6  ;;  %215 = vmatmul.mubr.f32.gmra.mrb[10].mxu1 %v40_v7 }
  0x39   :  { %179 = vmatprep.mubr.f32.mxu0 %v27_v8  ;;  %219 = vmatprep.mubr.f32.mxu1 %v43_v9 }
  0x3c   :  { %180 = vmatmul.mubr.f32.gmra.mrb[12].mxu0 %v26_v10  ;;  %220 = vmatmul.mubr.f32.gmra.mrb[12].mxu1 %v42_v11 }
  0x3d   :  { %184 = vmatprep.mubr.f32.mxu0 %v29_v12  ;;  %224 = vmatprep.mubr.f32.mxu1 %v45_v13 }
  0x40   :  { %185 = vmatmul.mubr.f32.gmra.mrb[14].mxu0 %v28_v14  ;;  %225 = vmatmul.mubr.f32.gmra.mrb[14].mxu1 %v44_v15 }
  0xf7   :  { %v299_v16 = vpop.f32.mrb[0].mxu0  ;;  %v323_v17 = vpop.f32.mrb[0].mxu1 }
  0xf8   :  { %v300_v19 = vpop.f32.mrb[1].mxu0  ;;  %v324_v20 = vpop.f32.mrb[1].mxu1 }
  0xf9   :  { %v301_v21 = vadd.f32 %v300_v19, %v299_v16  ;;  %v325_v22 = vadd.f32 %v324_v20, %v323_v17 }
  0xfb   :  { %v152_v23 = vadd.f32 %v301_v21, %v610_v18  ;;  %v192_v24 = vadd.f32 %v325_v22, %v610_v18  ;;  %v302_v25 = vpop.f32.mrb[2].mxu0  ;;  %v326_v26 = vpop.f32.mrb[2].mxu1 }
  0xfc   :  { %v303_v27 = vpop.f32.mrb[3].mxu0  ;;  %v327_v28 = vpop.f32.mrb[3].mxu1 }
  0xfd   :  { %v230_v29 = vmax.f32 %v152_v23, 0.0  ;;  %v238_v30 = vmax.f32 %v192_v24, 0.0  ;;  %v304_v31 = vadd.f32 %v303_v27, %v302_v25  ;;  %v328_v32 = vadd.f32 %v327_v28, %v326_v26 }
  0xff   :  { %246 = vst [vmem:[%s679_s3] sm:$0xff] %v230_v29  ;;  %254 = vst [vmem:[%s679_s3 + $0x40] sm:$0xff] %v238_v30  ;;  %v157_v33 = vadd.f32 %v304_v31, %v610_v18  ;;  %v197_v34 = vadd.f32 %v328_v32, %v610_v18  ;;  %v305_v35 = vpop.f32.mrb[4].mxu0  ;;  %v329_v36 = vpop.f32.mrb[4].mxu1 }
 0x100   :  { %v306_v37 = vpop.f32.mrb[5].mxu0  ;;  %v330_v38 = vpop.f32.mrb[5].mxu1 }
 0x101   :  { %v231_v39 = vmax.f32 %v157_v33, 0.0  ;;  %v239_v40 = vmax.f32 %v197_v34, 0.0  ;;  %v307_v41 = vadd.f32 %v306_v37, %v305_v35  ;;  %v331_v42 = vadd.f32 %v330_v38, %v329_v36 }
 0x103   :  { %247 = vst [vmem:[%s679_s3 + $0x8] sm:$0xff] %v231_v39  ;;  %255 = vst [vmem:[%s679_s3 + $0x48] sm:$0xff] %v239_v40  ;;  %v162_v43 = vadd.f32 %v307_v41, %v610_v18  ;;  %v202_v44 = vadd.f32 %v331_v42, %v610_v18  ;;  %v308_v45 = vpop.f32.mrb[6].mxu0  ;;  %v332_v46 = vpop.f32.mrb[6].mxu1 }
 0x104   :  { %v309_v47 = vpop.f32.mrb[7].mxu0  ;;  %v333_v48 = vpop.f32.mrb[7].mxu1 }
 0x105   :  { %v232_v49 = vmax.f32 %v162_v43, 0.0  ;;  %v240_v50 = vmax.f32 %v202_v44, 0.0  ;;  %v310_v51 = vadd.f32 %v309_v47, %v308_v45  ;;  %v334_v52 = vadd.f32 %v333_v48, %v332_v46 }
 0x107   :  { %248 = vst [vmem:[%s679_s3 + $0x10] sm:$0xff] %v232_v49  ;;  %256 = vst [vmem:[%s679_s3 + $0x50] sm:$0xff] %v240_v50  ;;  %v167_v53 = vadd.f32 %v310_v51, %v610_v18  ;;  %v207_v54 = vadd.f32 %v334_v52, %v610_v18  ;;  %v311_v55 = vpop.f32.mrb[8].mxu0  ;;  %v335_v56 = vpop.f32.mrb[8].mxu1 }
 0x108   :  { %v312_v57 = vpop.f32.mrb[9].mxu0  ;;  %v336_v58 = vpop.f32.mrb[9].mxu1 }
 0x109   :  { %v233_v59 = vmax.f32 %v167_v53, 0.0  ;;  %v241_v60 = vmax.f32 %v207_v54, 0.0  ;;  %v313_v61 = vadd.f32 %v312_v57, %v311_v55  ;;  %v337_v62 = vadd.f32 %v336_v58, %v335_v56 }
 0x10b   :  { %249 = vst [vmem:[%s679_s3 + $0x18] sm:$0xff] %v233_v59  ;;  %257 = vst [vmem:[%s679_s3 + $0x58] sm:$0xff] %v241_v60  ;;  %v172_v63 = vadd.f32 %v313_v61, %v610_v18  ;;  %v212_v0 = vadd.f32 %v337_v62, %v610_v18  ;;  %v314_v1 = vpop.f32.mrb[10].mxu0  ;;  %v338_v2 = vpop.f32.mrb[10].mxu1 }
 0x10c   :  { %v315_v3 = vpop.f32.mrb[11].mxu0  ;;  %v339_v4 = vpop.f32.mrb[11].mxu1 }
 0x10d   :  { %v234_v5 = vmax.f32 %v172_v63, 0.0  ;;  %v242_v6 = vmax.f32 %v212_v0, 0.0  ;;  %v316_v7 = vadd.f32 %v315_v3, %v314_v1  ;;  %v340_v8 = vadd.f32 %v339_v4, %v338_v2 }
 0x10f   :  { %250 = vst [vmem:[%s679_s3 + $0x20] sm:$0xff] %v234_v5  ;;  %258 = vst [vmem:[%s679_s3 + $0x60] sm:$0xff] %v242_v6  ;;  %v177_v9 = vadd.f32 %v316_v7, %v610_v18  ;;  %v217_v10 = vadd.f32 %v340_v8, %v610_v18  ;;  %v317_v11 = vpop.f32.mrb[12].mxu0  ;;  %v341_v12 = vpop.f32.mrb[12].mxu1 }
 0x110   :  { %v318_v13 = vpop.f32.mrb[13].mxu0  ;;  %v342_v14 = vpop.f32.mrb[13].mxu1 }
 0x111   :  { %v235_v15 = vmax.f32 %v177_v9, 0.0  ;;  %v243_v16 = vmax.f32 %v217_v10, 0.0  ;;  %v319_v17 = vadd.f32 %v318_v13, %v317_v11  ;;  %v343_v19 = vadd.f32 %v342_v14, %v341_v12 }
 0x113   :  { %251 = vst [vmem:[%s679_s3 + $0x28] sm:$0xff] %v235_v15  ;;  %259 = vst [vmem:[%s679_s3 + $0x68] sm:$0xff] %v243_v16  ;;  %v182_v20 = vadd.f32 %v319_v17, %v610_v18  ;;  %v222_v21 = vadd.f32 %v343_v19, %v610_v18  ;;  %v320_v22 = vpop.f32.mrb[14].mxu0  ;;  %v344_v23 = vpop.f32.mrb[14].mxu1 }
 0x114   :  { %v321_v24 = vpop.f32.mrb[15].mxu0  ;;  %v345_v25 = vpop.f32.mrb[15].mxu1 }
 0x115   :  { %v236_v26 = vmax.f32 %v182_v20, 0.0  ;;  %v244_v27 = vmax.f32 %v222_v21, 0.0  ;;  %v322_v28 = vadd.f32 %v321_v24, %v320_v22  ;;  %v346_v29 = vadd.f32 %v345_v25, %v344_v23 }
 0x117   :  { %252 = vst [vmem:[%s679_s3 + $0x30] sm:$0xff] %v236_v26  ;;  %260 = vst [vmem:[%s679_s3 + $0x70] sm:$0xff] %v244_v27  ;;  %v187_v30 = vadd.f32 %v322_v28, %v610_v18  ;;  %v227_v31 = vadd.f32 %v346_v29, %v610_v18 }
 0x119   :  { %v237_v32 = vmax.f32 %v187_v30, 0.0  ;;  %v245_v33 = vmax.f32 %v227_v31, 0.0 }
 0x11b   :  { %253 = vst [vmem:[%s679_s3 + $0x38] sm:$0xff] %v237_v32  ;;  %261 = vst [vmem:[%s679_s3 + $0x78] sm:$0xff] %v245_v33 }

// kernel: base_cnn_forward.3
= control target key start
LH: loop header
LB: loop body
LE: loop exit
PB: predicated region body
PF: predicated region fallthrough
CT: control target
= control target key end

     0   :  { %vm4742_vm0 = vmmov 0   ;;  %s6409_s1 = inlined_call_operand.vmem [shape: f32[512,128], index: 1, kind: input, shape index: {}]   ;;  %s6410_s0 = inlined_call_operand.vmem [shape: f32[8,4608], index: 0, kind: input, shape index: {}]   ;;  %s6411_s3 = inlined_call_operand.vmem [shape: f32[1152,128], index: 3, kind: input, shape index: {}]   ;;  %s6412_s2 = inlined_call_operand.vmem [shape: f32[1,128], index: 2, kind: input, shape index: {}]   ;;  %s6413_s5 = inlined_call_operand.vmem [shape: f32[128,512], index: 5, kind: input, shape index: {}]   ;;  %s6414_s7 = inlined_call_operand.vmem [shape: f32[512,128], index: 7, kind: input, shape index: {}]   ;;  %s6415_s4 = inlined_call_operand.vmem [shape: f32[1,128], index: 4, kind: input, shape index: {}]   ;;  %s6416_s6 = inlined_call_operand.vmem [shape: f32[1,512], index: 6, kind: input, shape index: {}]   ;;  %s6417_s8 = inlined_call_operand.vmem [shape: f32[1,128], index: 8, kind: input, shape index: {}]   ;;  %s6418_s9 = inlined_call_operand.vmem [shape: f32[8,128], index: 9, kind: output, shape index: {}]  }
   0x1   :  { %v48_v0 = vld [vmem:[%s6409_s1 + $0x80] sm:$0xff]  ;;  %v49_v1 = vld [vmem:[%s6409_s1 + $0x88] sm:$0xff]  ;;  %v50_v11 = vld [vmem:[%s6409_s1 + $0x90] sm:$0xff] }
   0x2   :  { %v32_v2 = vld [vmem:[%s6409_s1] sm:$0xff]  ;;  %v4803_v3 = vpack.c.bf16 %v49_v1, %v48_v0  ;;  %v33_v4 = vld [vmem:[%s6409_s1 + $0x8] sm:$0xff]  ;;  %v51_v13 = vld [vmem:[%s6409_s1 + $0x98] sm:$0xff] }
   0x3   :  { %v80_v5 = vld [vmem:[%s6409_s1 + $0x180] sm:$0xff]  ;;  %v81_v6 = vld [vmem:[%s6409_s1 + $0x188] sm:$0xff]  ;;  %v4814_v7 = vpack.c.bf16 %v33_v4, %v32_v2  ;;  %v34_v14 = vld [vmem:[%s6409_s1 + $0x10] sm:$0xff]  ;;  %v4841_v16 = vpack.c.bf16 %v51_v13, %v50_v11 }
   0x4   :  { %v4816_v8 = vpack.c.bf16 %v81_v6, %v80_v5  ;;  %v64_v9 = vld [vmem:[%s6409_s1 + $0x100] sm:$0xff]  ;;  %v65_v10 = vld [vmem:[%s6409_s1 + $0x108] sm:$0xff]  ;;  %3818 = vmatprep.subr.bf16.mxu0 %v4803_v3  ;;  %v35_v15 = vld [vmem:[%s6409_s1 + $0x18] sm:$0xff] }
   0x5   :  { %v4828_v12 = vpack.c.bf16 %v65_v10, %v64_v9  ;;  %3820 = vmatpush3.bf16.msra.mxu0 %v4814_v7  ;;  %v4843_v17 = vpack.c.bf16 %v35_v15, %v34_v14  ;;  %v82_v18 = vld [vmem:[%s6409_s1 + $0x190] sm:$0xff]  ;;  %v83_v19 = vld [vmem:[%s6409_s1 + $0x198] sm:$0xff]  ;;  %v52_v23 = vld [vmem:[%s6409_s1 + $0xa0] sm:$0xff] }
   0x6   :  { %3850 = vmatprep.subr.bf16.mxu1 %v4816_v8  ;;  %v66_v20 = vld [vmem:[%s6409_s1 + $0x110] sm:$0xff]  ;;  %v4855_v21 = vpack.c.bf16 %v83_v19, %v82_v18  ;;  %v67_v22 = vld [vmem:[%s6409_s1 + $0x118] sm:$0xff]  ;;  %v53_v24 = vld [vmem:[%s6409_s1 + $0xa8] sm:$0xff]  ;;  %3822 = vmatprep.subr.bf16.mxu0 %v4841_v16 }
   0x7   :  { %3852 = vmatpush3.bf16.msra.mxu1 %v4828_v12  ;;  %v4867_v25 = vpack.c.bf16 %v67_v22, %v66_v20  ;;  %v4869_v26 = vpack.c.bf16 %v53_v24, %v52_v23  ;;  %v36_v27 = vld [vmem:[%s6409_s1 + $0x20] sm:$0xff]  ;;  %v37_v28 = vld [vmem:[%s6409_s1 + $0x28] sm:$0xff]  ;;  %v54_v35 = vld [vmem:[%s6409_s1 + $0xb0] sm:$0xff] }
   0x8   :  { %v84_v29 = vld [vmem:[%s6409_s1 + $0x1a0] sm:$0xff]  ;;  %3854 = vmatprep.subr.bf16.mxu1 %v4855_v21  ;;  %v85_v30 = vld [vmem:[%s6409_s1 + $0x1a8] sm:$0xff]  ;;  %v4891_v33 = vpack.c.bf16 %v37_v28, %v36_v27  ;;  %v55_v36 = vld [vmem:[%s6409_s1 + $0xb8] sm:$0xff] }
   0x9   :  { %v68_v31 = vld [vmem:[%s6409_s1 + $0x120] sm:$0xff]  ;;  %v69_v32 = vld [vmem:[%s6409_s1 + $0x128] sm:$0xff]  ;;  %3824 = vmatpush3.bf16.msra.mxu0 %v4843_v17  ;;  %v4893_v34 = vpack.c.bf16 %v85_v30, %v84_v29  ;;  %v38_v37 = vld [vmem:[%s6409_s1 + $0x30] sm:$0xff]  ;;  %v4908_v39 = vpack.c.bf16 %v55_v36, %v54_v35 }
   0xa   :  { %3826 = vmatprep.subr.bf16.mxu0 %v4869_v26  ;;  %v4906_v38 = vpack.c.bf16 %v69_v32, %v68_v31  ;;  %v39_v40 = vld [vmem:[%s6409_s1 + $0x38] sm:$0xff]  ;;  %v86_v41 = vld [vmem:[%s6409_s1 + $0x1b0] sm:$0xff]  ;;  %v56_v46 = vld [vmem:[%s6409_s1 + $0xc0] sm:$0xff] }
   0xb   :  { %3856 = vmatpush3.bf16.msra.mxu1 %v4867_v25  ;;  %v87_v42 = vld [vmem:[%s6409_s1 + $0x1b8] sm:$0xff]  ;;  %v70_v44 = vld [vmem:[%s6409_s1 + $0x130] sm:$0xff]  ;;  %v57_v47 = vld [vmem:[%s6409_s1 + $0xc8] sm:$0xff]  ;;  %v4935_v48 = vpack.c.bf16 %v39_v40, %v38_v37 }
   0xc   :  { %3858 = vmatprep.subr.bf16.mxu1 %v4893_v34  ;;  %v4920_v43 = vpack.c.bf16 %v87_v42, %v86_v41  ;;  %v71_v45 = vld [vmem:[%s6409_s1 + $0x138] sm:$0xff]  ;;  %v88_v49 = vld [vmem:[%s6409_s1 + $0x1c0] sm:$0xff]  ;;  %v89_v50 = vld [vmem:[%s6409_s1 + $0x1c8] sm:$0xff]  ;;  %v4947_v52 = vpack.c.bf16 %v57_v47, %v56_v46 }
   0xd   :  { %3828 = vmatpush3.bf16.msra.mxu0 %v4891_v33  ;;  %v4945_v51 = vpack.c.bf16 %v71_v45, %v70_v44  ;;  %v40_v53 = vld [vmem:[%s6409_s1 + $0x40] sm:$0xff]  ;;  %v41_v54 = vld [vmem:[%s6409_s1 + $0x48] sm:$0xff]  ;;  %v4959_v56 = vpack.c.bf16 %v89_v50, %v88_v49  ;;  %v58_v58 = vld [vmem:[%s6409_s1 + $0xd0] sm:$0xff] }
   0xe   :  { %3830 = vmatprep.subr.bf16.mxu0 %v4908_v39  ;;  %v72_v55 = vld [vmem:[%s6409_s1 + $0x140] sm:$0xff]  ;;  %v73_v57 = vld [vmem:[%s6409_s1 + $0x148] sm:$0xff]  ;;  %v59_v59 = vld [vmem:[%s6409_s1 + $0xd8] sm:$0xff]  ;;  %v4977_v62 = vpack.c.bf16 %v41_v54, %v40_v53 }
   0xf   :  { %3860 = vmatpush3.bf16.msra.mxu1 %v4906_v38  ;;  %v90_v60 = vld [vmem:[%s6409_s1 + $0x1d0] sm:$0xff]  ;;  %v91_v61 = vld [vmem:[%s6409_s1 + $0x1d8] sm:$0xff]  ;;  %v4981_v63 = vpack.c.bf16 %v73_v57, %v72_v55  ;;  %v4983_v0 = vpack.c.bf16 %v59_v59, %v58_v58  ;;  %v60_v9 = vld [vmem:[%s6409_s1 + $0xe0] sm:$0xff] }
  0x10   :  { %3862 = vmatprep.subr.bf16.mxu1 %v4920_v43  ;;  %v42_v1 = vld [vmem:[%s6409_s1 + $0x50] sm:$0xff]  ;;  %v43_v2 = vld [vmem:[%s6409_s1 + $0x58] sm:$0xff]  ;;  %v4995_v5 = vpack.c.bf16 %v91_v61, %v90_v60  ;;  %v61_v10 = vld [vmem:[%s6409_s1 + $0xe8] sm:$0xff]  ;;  %v4741_v61 = vmov 0.0|0.0  }
  0x11   :  { %3832 = vmatpush3.bf16.msra.mxu0 %v4935_v48  ;;  %v74_v4 = vld [vmem:[%s6409_s1 + $0x150] sm:$0xff]  ;;  %v75_v6 = vld [vmem:[%s6409_s1 + $0x158] sm:$0xff]  ;;  %v92_v11 = vld [vmem:[%s6409_s1 + $0x1e0] sm:$0xff]  ;;  %v5013_v14 = vpack.c.bf16 %v43_v2, %v42_v1  ;;  %v5025_v20 = vpack.c.bf16 %v61_v10, %v60_v9 }
  0x12   :  { %3834 = vmatprep.subr.bf16.mxu0 %v4947_v52  ;;  %v93_v13 = vld [vmem:[%s6409_s1 + $0x1e8] sm:$0xff]  ;;  %v44_v15 = vld [vmem:[%s6409_s1 + $0x60] sm:$0xff]  ;;  %v5023_v19 = vpack.c.bf16 %v75_v6, %v74_v4  ;;  %v62_v28 = vld [vmem:[%s6409_s1 + $0xf0] sm:$0xff] }
  0x13   :  { %3864 = vmatpush3.bf16.msra.mxu1 %v4945_v51  ;;  %v45_v18 = vld [vmem:[%s6409_s1 + $0x68] sm:$0xff]  ;;  %v76_v22 = vld [vmem:[%s6409_s1 + $0x160] sm:$0xff]  ;;  %v5037_v27 = vpack.c.bf16 %v93_v13, %v92_v11  ;;  %v63_v29 = vld [vmem:[%s6409_s1 + $0xf8] sm:$0xff] }
  0x14   :  { %3866 = vmatprep.subr.bf16.mxu1 %v4959_v56  ;;  %v77_v23 = vld [vmem:[%s6409_s1 + $0x168] sm:$0xff]  ;;  %v100_v30 = vld [vmem:[%s6410_s0 + $0x18] sm:$0xff]  ;;  %v94_v31 = vld [vmem:[%s6409_s1 + $0x1f0] sm:$0xff]  ;;  %v5055_v35 = vpack.c.bf16 %v45_v18, %v44_v15  ;;  %v5061_v37 = vpack.c.bf16 %v63_v29, %v62_v28 }
  0x15   :  { %3836 = vmatpush3.bf16.msra.mxu0 %v4977_v62  ;;  %v98_v24 = vld [vmem:[%s6410_s0 + $0x8] sm:$0xff]  ;;  %v95_v32 = vld [vmem:[%s6409_s1 + $0x1f8] sm:$0xff]  ;;  %241 = vmatprep.mubr.f32.mxu1 %v100_v30  ;;  %v5059_v36 = vpack.c.bf16 %v77_v23, %v76_v22  ;;  %v46_v40 = vld [vmem:[%s6409_s1 + $0x70] sm:$0xff] }
  0x16   :  { %3838 = vmatprep.subr.bf16.mxu0 %v4983_v0  ;;  %171 = vmatprep.mubr.f32.mxu0 %v98_v24  ;;  %v47_v41 = vld [vmem:[%s6409_s1 + $0x78] sm:$0xff]  ;;  %v5070_v42 = vpack.c.bf16 %v95_v32, %v94_v31  ;;  %v78_v44 = vld [vmem:[%s6409_s1 + $0x170] sm:$0xff]  ;;  %v97_v49 = vld [vmem:[%s6410_s0] sm:$0xff] }
  0x17   :  { %3868 = vmatpush3.bf16.msra.mxu1 %v4981_v63  ;;  %v79_v45 = vld [vmem:[%s6409_s1 + $0x178] sm:$0xff]  ;;  %v5079_v46 = vpack.c.bf16 %v47_v41, %v46_v40  ;;  %v99_v50 = vld [vmem:[%s6410_s0 + $0x10] sm:$0xff]  ;;  %v265_v53 = vld [vmem:[%s6410_s0 + $0x28] sm:$0xff] }
  0x18   :  { %3870 = vmatprep.subr.bf16.mxu1 %v4995_v5  ;;  %v5083_v47 = vpack.c.bf16 %v79_v45, %v78_v44  ;;  %v267_v54 = vld [vmem:[%s6410_s0 + $0x38] sm:$0xff]  ;;  %v248_v55 = vld [vmem:[%s6411_s3] sm:$0xff]  ;;  %v249_v57 = vld [vmem:[%s6411_s3 + $0x8] sm:$0xff] }
  0x19   :  { %3840 = vmatpush3.bf16.msra.mxu0 %v5013_v14  ;;  %v264_v58 = vld [vmem:[%s6410_s0 + $0x20] sm:$0xff]  ;;  %v266_v59 = vld [vmem:[%s6410_s0 + $0x30] sm:$0xff]  ;;  %v3970_v60 = vpack.c.bf16 %v249_v57, %v248_v55  ;;  %v251_v2 = vld [vmem:[%s6411_s3 + $0x18] sm:$0xff] }
  0x1a   :  { %3842 = vmatprep.subr.bf16.mxu0 %v5025_v20  ;;  %v250_v1 = vld [vmem:[%s6411_s3 + $0x10] sm:$0xff]  ;;  %v252_v6 = vld [vmem:[%s6411_s3 + $0x20] sm:$0xff]  ;;  %v253_v9 = vld [vmem:[%s6411_s3 + $0x28] sm:$0xff] }
  0x1b   :  { %3872 = vmatpush3.bf16.msra.mxu1 %v5023_v19  ;;  %v3973_v4 = vpack.c.bf16 %v251_v2, %v250_v1  ;;  %v3976_v10 = vpack.c.bf16 %v253_v9, %v252_v6  ;;  %v254_v11 = vld [vmem:[%s6411_s3 + $0x30] sm:$0xff]  ;;  %v255_v13 = vld [vmem:[%s6411_s3 + $0x38] sm:$0xff]  ;;  %v256_v18 = vld [vmem:[%s6411_s3 + $0x40] sm:$0xff] }
  0x1c   :  { %3874 = vmatprep.subr.bf16.mxu1 %v5037_v27  ;;  %v3979_v15 = vpack.c.bf16 %v255_v13, %v254_v11  ;;  %v257_v22 = vld [vmem:[%s6411_s3 + $0x48] sm:$0xff]  ;;  %v258_v24 = vld [vmem:[%s6411_s3 + $0x50] sm:$0xff]  ;;  %v259_v28 = vld [vmem:[%s6411_s3 + $0x58] sm:$0xff] }
  0x1d   :  { %3844 = vmatpush3.bf16.msra.mxu0 %v5055_v35  ;;  %v3982_v23 = vpack.c.bf16 %v257_v22, %v256_v18  ;;  %v3985_v29 = vpack.c.bf16 %v259_v28, %v258_v24  ;;  %v260_v30 = vld [vmem:[%s6411_s3 + $0x60] sm:$0xff]  ;;  %v261_v31 = vld [vmem:[%s6411_s3 + $0x68] sm:$0xff]  ;;  %v262_v40 = vld [vmem:[%s6411_s3 + $0x70] sm:$0xff] }
  0x1e   :  { %3846 = vmatprep.subr.bf16.mxu0 %v5061_v37  ;;  %v3988_v32 = vpack.c.bf16 %v261_v31, %v260_v30  ;;  %v263_v41 = vld [vmem:[%s6411_s3 + $0x78] sm:$0xff]  ;;  %v409_v45 = vld [vmem:[%s6411_s3 + $0x80] sm:$0xff]  ;;  %v415_v1 = vld [vmem:[%s6411_s3 + $0xb0] sm:$0xff] }
  0x1f   :  { %3876 = vmatpush3.bf16.msra.mxu1 %v5059_v36  ;;  %v3991_v44 = vpack.c.bf16 %v263_v41, %v262_v40  ;;  %v412_v55 = vld [vmem:[%s6411_s3 + $0x98] sm:$0xff]  ;;  %v417_v6 = vld [vmem:[%s6411_s3 + $0xc0] sm:$0xff]  ;;  %v418_v9 = vld [vmem:[%s6411_s3 + $0xc8] sm:$0xff] }
  0x20   :  { %3878 = vmatprep.subr.bf16.mxu1 %v5070_v42  ;;  %v416_v2 = vld [vmem:[%s6411_s3 + $0xb8] sm:$0xff]  ;;  %v419_v11 = vld [vmem:[%s6411_s3 + $0xd0] sm:$0xff]  ;;  %v421_v18 = vld [vmem:[%s6411_s3 + $0xe0] sm:$0xff] }
  0x21   :  { %3848 = vmatpush3.bf16.msra.mxu0 %v5079_v46  ;;  %v420_v13 = vld [vmem:[%s6411_s3 + $0xd8] sm:$0xff]  ;;  %v422_v22 = vld [vmem:[%s6411_s3 + $0xe8] sm:$0xff]  ;;  %v423_v24 = vld [vmem:[%s6411_s3 + $0xf0] sm:$0xff] }
  0x22   :  { %3882 = vmatprep.subr.bf16.mxu0 %v4803_v3  ;;  %v424_v28 = vld [vmem:[%s6411_s3 + $0xf8] sm:$0xff]  ;;  %v5259_v31 = vld [vmem:[%s6412_s2] ss:$0 sm:$0xff] }
  0x23   :  { %3880 = vmatpush3.bf16.msra.mxu1 %v5083_v47 }
  0x24   :  { %3914 = vmatprep.subr.bf16.mxu1 %v4816_v8  ;;  %172 = vmatmul.mubr.f32.vlgmr.msra.gmra.mrb[0].mxu0 %v97_v49  ;;  %v410_v49 = vld [vmem:[%s6411_s3 + $0x88] sm:$0xff] }
  0x25   :  { %3884 = vmatpush3.bf16.msra.mxu0 %v4814_v7  ;;  %332 = vmatprep.mubr.f32.mxu0 %v265_v53  ;;  %v4743_v53 = vmov 0.0  }
  0x26   :  { %242 = vmatmul.mubr.f32.vlgmr.msra.gmra.mrb[0].mxu1 %v99_v50  ;;  %3886 = vmatprep.subr.bf16.mxu0 %v4841_v16  ;;  %v3946_v50 = vpack.c.bf16 %v410_v49, %v409_v45 }
  0x27   :  { %3916 = vmatpush3.bf16.msra.mxu1 %v4828_v12  ;;  %402 = vmatprep.mubr.f32.mxu1 %v267_v54  ;;  %v411_v54 = vld [vmem:[%s6411_s3 + $0x90] sm:$0xff] }
  0x28   :  { %3918 = vmatprep.subr.bf16.mxu1 %v4855_v21  ;;  %v3949_v57 = vpack.c.bf16 %v412_v55, %v411_v54  ;;  %v568_v55 = vld [vmem:[%s6410_s0 + $0x58] sm:$0xff] }
  0x29   :  { %3888 = vmatpush3.bf16.msra.mxu0 %v4843_v17 }
  0x2a   :  { %3890 = vmatprep.subr.bf16.mxu0 %v4869_v26 }
  0x2b   :  { %3920 = vmatpush3.bf16.msra.mxu1 %v4867_v25 }
  0x2c   :  { %3922 = vmatprep.subr.bf16.mxu1 %v4893_v34 }
  0x2d   :  { %3892 = vmatpush3.bf16.msra.mxu0 %v4891_v33 }
  0x2e   :  { %3894 = vmatprep.subr.bf16.mxu0 %v4908_v39 }
  0x2f   :  { %3924 = vmatpush3.bf16.msra.mxu1 %v4906_v38 }
  0x30   :  { %3926 = vmatprep.subr.bf16.mxu1 %v4920_v43 }
  0x31   :  { %3896 = vmatpush3.bf16.msra.mxu0 %v4935_v48 }
  0x32   :  { %3898 = vmatprep.subr.bf16.mxu0 %v4947_v52 }
  0x33   :  { %3928 = vmatpush3.bf16.msra.mxu1 %v4945_v51 }
  0x34   :  { %3930 = vmatprep.subr.bf16.mxu1 %v4959_v56 }
  0x35   :  { %3900 = vmatpush3.bf16.msra.mxu0 %v4977_v62 }
  0x36   :  { %3902 = vmatprep.subr.bf16.mxu0 %v4983_v0 }
  0x37   :  { %3932 = vmatpush3.bf16.msra.mxu1 %v4981_v63 }
  0x38   :  { %3934 = vmatprep.subr.bf16.mxu1 %v4995_v5 }
  0x39   :  { %3904 = vmatpush3.bf16.msra.mxu0 %v5013_v14 }
  0x3a   :  { %3906 = vmatprep.subr.bf16.mxu0 %v5025_v20 }
  0x3b   :  { %3936 = vmatpush3.bf16.msra.mxu1 %v5023_v19 }
  0x3c   :  { %3938 = vmatprep.subr.bf16.mxu1 %v5037_v27 }
  0x3d   :  { %3908 = vmatpush3.bf16.msra.mxu0 %v5055_v35 }
  0x3e   :  { %3910 = vmatprep.subr.bf16.mxu0 %v5061_v37 }
  0x3f   :  { %3940 = vmatpush3.bf16.msra.mxu1 %v5059_v36 }
  0x40   :  { %3942 = vmatprep.subr.bf16.mxu1 %v5070_v42 }
  0x41   :  { %3912 = vmatpush3.bf16.msra.mxu0 %v5079_v46 }
  0x42   :  { %3945 = vmatprep.subr.bf16.mxu0 %v4741_v61 }
  0x43   :  { %3944 = vmatpush3.bf16.msra.mxu1 %v5083_v47 }
  0x44   :  { %3969 = vmatprep.subr.bf16.mxu1 %v4741_v61  ;;  %333 = vmatmul.mubr.f32.vlgmr.msra.gmra.mrb[2].mxu0 %v264_v58  ;;  %v413_v58 = vld [vmem:[%s6411_s3 + $0xa0] sm:$0xff] }
  0x45   :  { %3534 = vmatprep.mubr.msk.f32.mxu0 %vm4742_vm0, %v4743_v53  ;;  %3947 = vmatpush3.bf16.msra.mxu0 %v3946_v50 }
  0x46   :  { %403 = vmatmul.mubr.f32.vlgmr.msra.gmra.mrb[2].mxu1 %v266_v59  ;;  %3948 = vmatprep.subr.bf16.mxu0 %v4741_v61  ;;  %v414_v59 = vld [vmem:[%s6411_s3 + $0xa8] sm:$0xff] }
  0x47   :  { %3971 = vmatpush3.bf16.msra.mxu1 %v3970_v60  ;;  %3569 = vmatprep.mubr.msk.f32.mxu1 %vm4742_vm0, %v4743_v53  ;;  %v3952_v60 = vpack.c.bf16 %v414_v59, %v413_v58 }
  0x48   :  { %3972 = vmatprep.subr.bf16.mxu1 %v4741_v61 }
  0x49   :  { %3950 = vmatpush3.bf16.msra.mxu0 %v3949_v57 }
  0x4a   :  { %3951 = vmatprep.subr.bf16.mxu0 %v4741_v61 }
  0x4b   :  { %3974 = vmatpush3.bf16.msra.mxu1 %v3973_v4  ;;  %v3955_v4 = vpack.c.bf16 %v416_v2, %v415_v1 }
  0x4c   :  { %3975 = vmatprep.subr.bf16.mxu1 %v4741_v61 }
  0x4d   :  { %3953 = vmatpush3.bf16.msra.mxu0 %v3952_v60 }
  0x4e   :  { %3954 = vmatprep.subr.bf16.mxu0 %v4741_v61 }
  0x4f   :  { %3977 = vmatpush3.bf16.msra.mxu1 %v3976_v10  ;;  %v3958_v10 = vpack.c.bf16 %v418_v9, %v417_v6  ;;  %v567_v9 = vld [vmem:[%s6410_s0 + $0x50] sm:$0xff] }
  0x50   :  { %3978 = vmatprep.subr.bf16.mxu1 %v4741_v61 }
  0x51   :  { %3956 = vmatpush3.bf16.msra.mxu0 %v3955_v4 }
  0x52   :  { %3957 = vmatprep.subr.bf16.mxu0 %v4741_v61 }
  0x53   :  { %3980 = vmatpush3.bf16.msra.mxu1 %v3979_v15  ;;  %v3961_v15 = vpack.c.bf16 %v420_v13, %v419_v11  ;;  %v566_v11 = vld [vmem:[%s6410_s0 + $0x48] sm:$0xff]  ;;  %v565_v13 = vld [vmem:[%s6410_s0 + $0x40] sm:$0xff] }
  0x54   :  { %3981 = vmatprep.subr.bf16.mxu1 %v4741_v61 }
  0x55   :  { %3959 = vmatpush3.bf16.msra.mxu0 %v3958_v10 }
  0x56   :  { %3960 = vmatprep.subr.bf16.mxu0 %v4741_v61 }
  0x57   :  { %3983 = vmatpush3.bf16.msra.mxu1 %v3982_v23  ;;  %v3964_v23 = vpack.c.bf16 %v422_v22, %v421_v18  ;;  %v711_v18 = vld [vmem:[%s6411_s3 + $0x108] sm:$0xff]  ;;  %v712_v22 = vld [vmem:[%s6411_s3 + $0x110] sm:$0xff] }
  0x58   :  { %3984 = vmatprep.subr.bf16.mxu1 %v4741_v61 }
  0x59   :  { %3962 = vmatpush3.bf16.msra.mxu0 %v3961_v15  ;;  %v710_v15 = vld [vmem:[%s6411_s3 + $0x100] sm:$0xff] }
  0x5a   :  { %3963 = vmatprep.subr.bf16.mxu0 %v4741_v61 }
  0x5b   :  { %3986 = vmatpush3.bf16.msra.mxu1 %v3985_v29  ;;  %v3967_v29 = vpack.c.bf16 %v424_v28, %v423_v24  ;;  %v713_v24 = vld [vmem:[%s6411_s3 + $0x118] sm:$0xff] }
  0x5c   :  { %3987 = vmatprep.subr.bf16.mxu1 %v4741_v61  ;;  %v4061_v28 = vpack.c.bf16 %v713_v24, %v712_v22 }
  0x5d   :  { %3965 = vmatpush3.bf16.msra.mxu0 %v3964_v23  ;;  %v4058_v23 = vpack.c.bf16 %v711_v18, %v710_v15 }
  0x5e   :  { %3966 = vmatprep.subr.bf16.mxu0 %v4741_v61 }
  0x5f   :  { %3989 = vmatpush3.bf16.msra.mxu1 %v3988_v32 }
  0x60   :  { %3990 = vmatprep.subr.bf16.mxu1 %v4741_v61 }
  0x61   :  { %3968 = vmatpush3.bf16.msra.mxu0 %v3967_v29  ;;  %v714_v29 = vld [vmem:[%s6411_s3 + $0x120] sm:$0xff] }
  0x62   :  { %3994 = vmatprep.subr.bf16.mxu0 %v4803_v3 }
  0x63   :  { %3992 = vmatpush3.bf16.msra.mxu1 %v3991_v44 }
  0x64   :  { %4026 = vmatprep.subr.bf16.mxu1 %v4816_v8 }
  0xf7   :  { %v2681_v30 = vpop.f32.mrb[0].mxu0 }
  0xf8   :  { %v2682_v32 = vpop.f32.mrb[1].mxu0 }
  0xf9   :  { %v2716_v40 = vpop.f32.mrb[0].mxu1  ;;  %v2683_v41 = vadd.f32 %v2682_v32, %v2681_v30  ;;  %v715_v30 = vld [vmem:[%s6411_s3 + $0x128] sm:$0xff] }
  0xfa   :  { %v2717_v44 = vpop.f32.mrb[1].mxu1  ;;  %v4064_v32 = vpack.c.bf16 %v715_v30, %v714_v29 }
  0xfb   :  { %v2718_v45 = vadd.f32 %v2717_v44, %v2716_v40  ;;  %v174_v49 = vadd.f32 %v2683_v41, %v5259_v31  ;;  %v716_v40 = vld [vmem:[%s6411_s3 + $0x130] sm:$0xff]  ;;  %v717_v41 = vld [vmem:[%s6411_s3 + $0x138] sm:$0xff] }
  0xfc   :  { %v4067_v44 = vpack.c.bf16 %v717_v41, %v716_v40 }
  0xfd   :  { %v244_v50 = vadd.f32 %v2718_v45, %v174_v49  ;;  %v718_v45 = vld [vmem:[%s6411_s3 + $0x140] sm:$0xff]  ;;  %v719_v49 = vld [vmem:[%s6411_s3 + $0x148] sm:$0xff] }
  0xff   :  { %v247_v54 = vmax.f32 %v244_v50, 0.0  ;;  %v4070_v50 = vpack.c.bf16 %v719_v49, %v718_v45  ;;  %v799_v45 = vld [vmem:[%s6410_s0 + $0x70] sm:$0xff]  ;;  %v942_v49 = vld [vmem:[%s6411_s3 + $0x180] sm:$0xff] }
 0x101   :  { %3570 = vmatmul.mubr.f32.vlgmr.msra.gmra.mrb[4].mxu1 %v247_v54  ;;  %v720_v54 = vld [vmem:[%s6411_s3 + $0x150] sm:$0xff] }
 0x102   :  { %4028 = vmatpush3.bf16.msra.mxu1 %v4828_v12  ;;  %703 = vmatprep.mubr.f32.mxu1 %v568_v55  ;;  %v721_v55 = vld [vmem:[%s6411_s3 + $0x158] sm:$0xff] }
 0x103   :  { %4030 = vmatprep.subr.bf16.mxu1 %v4855_v21 }
 0x106   :  { %4032 = vmatpush3.bf16.msra.mxu1 %v4867_v25 }
 0x107   :  { %4034 = vmatprep.subr.bf16.mxu1 %v4893_v34 }
 0x10a   :  { %4036 = vmatpush3.bf16.msra.mxu1 %v4906_v38 }
 0x10b   :  { %4038 = vmatprep.subr.bf16.mxu1 %v4920_v43 }
 0x10e   :  { %4040 = vmatpush3.bf16.msra.mxu1 %v4945_v51 }
 0x10f   :  { %4042 = vmatprep.subr.bf16.mxu1 %v4959_v56 }
 0x112   :  { %4044 = vmatpush3.bf16.msra.mxu1 %v4981_v63 }
 0x113   :  { %4046 = vmatprep.subr.bf16.mxu1 %v4995_v5 }
 0x116   :  { %4048 = vmatpush3.bf16.msra.mxu1 %v5023_v19 }
 0x117   :  { %v2751_v57 = vpop.f32.mrb[2].mxu0  ;;  %4050 = vmatprep.subr.bf16.mxu1 %v5037_v27 }
 0x118   :  { %v2752_v58 = vpop.f32.mrb[3].mxu0 }
 0x119   :  { %v2786_v59 = vpop.f32.mrb[2].mxu1  ;;  %v2753_v60 = vadd.f32 %v2752_v58, %v2751_v57  ;;  %v4073_v57 = vpack.c.bf16 %v721_v55, %v720_v54  ;;  %v722_v58 = vld [vmem:[%s6411_s3 + $0x160] sm:$0xff]  ;;  %v944_v54 = vld [vmem:[%s6411_s3 + $0x190] sm:$0xff] }
 0x11a   :  { %v2787_v1 = vpop.f32.mrb[3].mxu1  ;;  %4052 = vmatpush3.bf16.msra.mxu1 %v5059_v36 }
 0x11b   :  { %v2788_v2 = vadd.f32 %v2787_v1, %v2786_v59  ;;  %v335_v4 = vadd.f32 %v2753_v60, %v5259_v31  ;;  %4054 = vmatprep.subr.bf16.mxu1 %v5070_v42  ;;  %v723_v59 = vld [vmem:[%s6411_s3 + $0x168] sm:$0xff]  ;;  %v724_v1 = vld [vmem:[%s6411_s3 + $0x170] sm:$0xff] }
 0x11c   :  { %v4076_v60 = vpack.c.bf16 %v723_v59, %v722_v58  ;;  %v946_v59 = vld [vmem:[%s6411_s3 + $0x1a0] sm:$0xff] }
 0x11d   :  { %v405_v6 = vadd.f32 %v2788_v2, %v335_v4  ;;  %v725_v2 = vld [vmem:[%s6411_s3 + $0x178] sm:$0xff] }
 0x11e   :  { %4056 = vmatpush3.bf16.msra.mxu1 %v5083_v47  ;;  %v4079_v4 = vpack.c.bf16 %v725_v2, %v724_v1  ;;  %v948_v2 = vld [vmem:[%s6411_s3 + $0x1b0] sm:$0xff] }
 0x11f   :  { %v408_v10 = vmax.f32 %v405_v6, 0.0  ;;  %4082 = vmatprep.subr.bf16.mxu1 %v4803_v3  ;;  %v798_v6 = vld [vmem:[%s6410_s0 + $0x68] sm:$0xff] }
 0x121   :  { %3535 = vmatmul.mubr.f32.vlgmr.msra.gmra.mrb[4].mxu0 %v408_v10  ;;  %704 = vmatmul.mubr.f32.vlgmr.msra.gmra.mrb[6].mxu1 %v567_v9  ;;  %v797_v9 = vld [vmem:[%s6410_s0 + $0x60] sm:$0xff] }
 0x122   :  { %3996 = vmatpush3.bf16.msra.mxu0 %v4814_v7  ;;  %633 = vmatprep.mubr.f32.mxu0 %v566_v11 }
 0x123   :  { %3998 = vmatprep.subr.bf16.mxu0 %v4841_v16  ;;  %4084 = vmatpush3.bf16.msra.mxu1 %v4814_v7 }
 0x124   :  { %4086 = vmatprep.subr.bf16.mxu1 %v4841_v16  ;;  %865 = vmatprep.mubr.f32.mxu1 %v798_v6 }
 0x126   :  { %4000 = vmatpush3.bf16.msra.mxu0 %v4843_v17 }
 0x127   :  { %4002 = vmatprep.subr.bf16.mxu0 %v4869_v26  ;;  %4088 = vmatpush3.bf16.msra.mxu1 %v4843_v17 }
 0x128   :  { %4090 = vmatprep.subr.bf16.mxu1 %v4869_v26 }
 0x12a   :  { %4004 = vmatpush3.bf16.msra.mxu0 %v4891_v33 }
 0x12b   :  { %4006 = vmatprep.subr.bf16.mxu0 %v4908_v39  ;;  %4092 = vmatpush3.bf16.msra.mxu1 %v4891_v33 }
 0x12c   :  { %4094 = vmatprep.subr.bf16.mxu1 %v4908_v39 }
 0x12e   :  { %4008 = vmatpush3.bf16.msra.mxu0 %v4935_v48 }
 0x12f   :  { %4010 = vmatprep.subr.bf16.mxu0 %v4947_v52  ;;  %4096 = vmatpush3.bf16.msra.mxu1 %v4935_v48 }
 0x130   :  { %4098 = vmatprep.subr.bf16.mxu1 %v4947_v52 }
 0x132   :  { %4012 = vmatpush3.bf16.msra.mxu0 %v4977_v62 }
 0x133   :  { %4014 = vmatprep.subr.bf16.mxu0 %v4983_v0  ;;  %4100 = vmatpush3.bf16.msra.mxu1 %v4977_v62 }
 0x134   :  { %4102 = vmatprep.subr.bf16.mxu1 %v4983_v0 }
 0x136   :  { %4016 = vmatpush3.bf16.msra.mxu0 %v5013_v14 }
 0x137   :  { %4018 = vmatprep.subr.bf16.mxu0 %v5025_v20  ;;  %4104 = vmatpush3.bf16.msra.mxu1 %v5013_v14 }
 0x138   :  { %4106 = vmatprep.subr.bf16.mxu1 %v5025_v20 }
 0x13a   :  { %4020 = vmatpush3.bf16.msra.mxu0 %v5055_v35 }
 0x13b   :  { %4022 = vmatprep.subr.bf16.mxu0 %v5061_v37  ;;  %4108 = vmatpush3.bf16.msra.mxu1 %v5055_v35 }
 0x13c   :  { %4110 = vmatprep.subr.bf16.mxu1 %v5061_v37 }
 0x13e   :  { %4024 = vmatpush3.bf16.msra.mxu0 %v5079_v46 }
 0x13f   :  { %4057 = vmatprep.subr.bf16.mxu0 %v4741_v61  ;;  %4112 = vmatpush3.bf16.msra.mxu1 %v5079_v46 }
 0x140   :  { %4145 = vmatprep.subr.bf16.mxu1 %v4741_v61 }
 0x141   :  { %634 = vmatmul.mubr.f32.vlgmr.msra.gmra.mrb[6].mxu0 %v565_v13 }
 0x142   :  { %3604 = vmatprep.mubr.msk.f32.mxu0 %vm4742_vm0, %v4743_v53  ;;  %4059 = vmatpush3.bf16.msra.mxu0 %v4058_v23 }
 0x143   :  { %4060 = vmatprep.subr.bf16.mxu0 %v4741_v61  ;;  %866 = vmatmul.mubr.f32.vlgmr.msra.gmra.mrb[8].mxu1 %v797_v9  ;;  %v950_v9 = vld [vmem:[%s6411_s3 + $0x1c0] sm:$0xff] }
 0x144   :  { %3639 = vmatprep.mubr.msk.f32.mxu1 %vm4742_vm0, %v4743_v53 }
 0x146   :  { %4062 = vmatpush3.bf16.msra.mxu0 %v4061_v28 }
 0x147   :  { %4063 = vmatprep.subr.bf16.mxu0 %v4741_v61 }
 0x14a   :  { %4065 = vmatpush3.bf16.msra.mxu0 %v4064_v32 }
 0x14b   :  { %4066 = vmatprep.subr.bf16.mxu0 %v4741_v61 }
 0x14e   :  { %4068 = vmatpush3.bf16.msra.mxu0 %v4067_v44  ;;  %v800_v44 = vld [vmem:[%s6410_s0 + $0x78] sm:$0xff] }
 0x14f   :  { %4069 = vmatprep.subr.bf16.mxu0 %v4741_v61 }
 0x152   :  { %4071 = vmatpush3.bf16.msra.mxu0 %v4070_v50  ;;  %v943_v50 = vld [vmem:[%s6411_s3 + $0x188] sm:$0xff] }
 0x153   :  { %4072 = vmatprep.subr.bf16.mxu0 %v4741_v61  ;;  %v4146_v55 = vpack.c.bf16 %v943_v50, %v942_v49  ;;  %v1029_v49 = vld [vmem:[%s6410_s0 + $0x80] sm:$0xff] }
 0x155   :  { %4147 = vmatpush3.bf16.msra.mxu1 %v4146_v55 }
 0x156   :  { %4074 = vmatpush3.bf16.msra.mxu0 %v4073_v57  ;;  %v945_v57 = vld [vmem:[%s6411_s3 + $0x198] sm:$0xff]  ;;  %4148 = vmatprep.subr.bf16.mxu1 %v4741_v61 }
 0x157   :  { %4075 = vmatprep.subr.bf16.mxu0 %v4741_v61  ;;  %v4149_v58 = vpack.c.bf16 %v945_v57, %v944_v54 }
 0x159   :  { %4150 = vmatpush3.bf16.msra.mxu1 %v4149_v58 }
 0x15a   :  { %4077 = vmatpush3.bf16.msra.mxu0 %v4076_v60  ;;  %v947_v60 = vld [vmem:[%s6411_s3 + $0x1a8] sm:$0xff]  ;;  %4151 = vmatprep.subr.bf16.mxu1 %v4741_v61 }
 0x15b   :  { %4078 = vmatprep.subr.bf16.mxu0 %v4741_v61  ;;  %v4152_v1 = vpack.c.bf16 %v947_v60, %v946_v59 }
 0x15d   :  { %4153 = vmatpush3.bf16.msra.mxu1 %v4152_v1 }
 0x15e   :  { %4080 = vmatpush3.bf16.msra.mxu0 %v4079_v4  ;;  %v949_v4 = vld [vmem:[%s6411_s3 + $0x1b8] sm:$0xff]  ;;  %4154 = vmatprep.subr.bf16.mxu1 %v4741_v61 }
 0x15f   :  { %4114 = vmatprep.subr.bf16.mxu0 %v4816_v8  ;;  %v4155_v6 = vpack.c.bf16 %v949_v4, %v948_v2  ;;  %v1032_v4 = vld [vmem:[%s6410_s0 + $0x98] sm:$0xff] }
 0x161   :  { %4156 = vmatpush3.bf16.msra.mxu1 %v4155_v6  ;;  %v1174_v6 = vld [vmem:[%s6411_s3 + $0x200] sm:$0xff] }
 0x162   :  { %4157 = vmatprep.subr.bf16.mxu1 %v4741_v61 }
 0x1d4   :  { %v561_v10 = vpop.f32.mrb[4].mxu1 }
 0x1d5   :  { %v3571_v11 = vpop.f32.mrb[5].mxu1 }
 0x1f4   :  { %v491_v13 = vpop.f32.mrb[4].mxu0  ;;  %v2890_v15 = vpop.f32.mrb[6].mxu1 }
 0x1f5   :  { %v5389_v18 = vadd.f32 %v561_v10, %v491_v13  ;;  %v3536_v22 = vpop.f32.mrb[5].mxu0  ;;  %v2891_v23 = vpop.f32.mrb[7].mxu1  ;;  %v951_v10 = vld [vmem:[%s6411_s3 + $0x1c8] sm:$0xff]  ;;  %v952_v13 = vld [vmem:[%s6411_s3 + $0x1d0] sm:$0xff] }
 0x1f6   :  { %v2892_v24 = vadd.f32 %v2891_v23, %v2890_v15  ;;  %v4158_v11 = vpack.c.bf16 %v951_v10, %v950_v9  ;;  %v953_v15 = vld [vmem:[%s6411_s3 + $0x1d8] sm:$0xff]  ;;  %v1175_v9 = vld [vmem:[%s6411_s3 + $0x208] sm:$0xff]  ;;  %v1176_v10 = vld [vmem:[%s6411_s3 + $0x210] sm:$0xff] }
 0x1f7   :  { %v4161_v22 = vpack.c.bf16 %v953_v15, %v952_v13  ;;  %v1177_v13 = vld [vmem:[%s6411_s3 + $0x218] sm:$0xff] }
 0x1f8   :  { %4159 = vmatpush3.bf16.msra.mxu1 %v4158_v11  ;;  %v4234_v11 = vpack.c.bf16 %v1175_v9, %v1174_v6  ;;  %v4237_v15 = vpack.c.bf16 %v1177_v13, %v1176_v10  ;;  %v1261_v6 = vld [vmem:[%s6410_s0 + $0xa0] sm:$0xff] }
 0x1f9   :  { %4160 = vmatprep.subr.bf16.mxu1 %v4741_v61 }
 0x1fc   :  { %4162 = vmatpush3.bf16.msra.mxu1 %v4161_v22  ;;  %v1178_v22 = vld [vmem:[%s6411_s3 + $0x220] sm:$0xff] }
 0x1fd   :  { %4163 = vmatprep.subr.bf16.mxu1 %v4741_v61 }
 0x214   :  { %v2855_v28 = vpop.f32.mrb[6].mxu0 }
 0x215   :  { %v2856_v29 = vpop.f32.mrb[7].mxu0 }
 0x216   :  { %v2857_v30 = vadd.f32 %v2856_v29, %v2855_v28  ;;  %v2942_v23 = vpop.f32.mrb[8].mxu1  ;;  %v954_v29 = vld [vmem:[%s6411_s3 + $0x1e0] sm:$0xff] }
 0x218   :  { %v636_v32 = vadd.f32 %v2857_v30, %v5259_v31  ;;  %v955_v30 = vld [vmem:[%s6411_s3 + $0x1e8] sm:$0xff] }
 0x21a   :  { %v706_v40 = vadd.f32 %v2892_v24, %v636_v32  ;;  %v2943_v24 = vpop.f32.mrb[9].mxu1  ;;  %v4164_v32 = vpack.c.bf16 %v955_v30, %v954_v29  ;;  %v1181_v29 = vld [vmem:[%s6411_s3 + $0x238] sm:$0xff] }
 0x21b   :  { %v2944_v28 = vadd.f32 %v2943_v24, %v2942_v23  ;;  %v1179_v23 = vld [vmem:[%s6411_s3 + $0x228] sm:$0xff] }
 0x21c   :  { %v709_v41 = vmax.f32 %v706_v40, 0.0  ;;  %4165 = vmatpush3.bf16.msra.mxu1 %v4164_v32  ;;  %v956_v40 = vld [vmem:[%s6411_s3 + $0x1f0] sm:$0xff]  ;;  %v4240_v24 = vpack.c.bf16 %v1179_v23, %v1178_v22  ;;  %v1182_v32 = vld [vmem:[%s6411_s3 + $0x240] sm:$0xff] }
 0x21d   :  { %4166 = vmatprep.subr.bf16.mxu1 %v4741_v61  ;;  %v868_v57 = vadd.f32 %v2944_v28, %v5259_v31  ;;  %v1180_v28 = vld [vmem:[%s6411_s3 + $0x230] sm:$0xff] }
 0x21e   :  { %3605 = vmatmul.mubr.f32.vlgmr.msra.gmra.mrb[8].mxu0 %v709_v41  ;;  %v957_v41 = vld [vmem:[%s6411_s3 + $0x1f8] sm:$0xff]  ;;  %v4243_v30 = vpack.c.bf16 %v1181_v29, %v1180_v28 }
 0x21f   :  { %4116 = vmatpush3.bf16.msra.mxu0 %v4828_v12  ;;  %935 = vmatprep.mubr.f32.mxu0 %v800_v44  ;;  %v4167_v44 = vpack.c.bf16 %v957_v41, %v956_v40  ;;  %v1183_v40 = vld [vmem:[%s6411_s3 + $0x248] sm:$0xff]  ;;  %v1264_v29 = vld [vmem:[%s6410_s0 + $0xb8] sm:$0xff] }
 0x220   :  { %4118 = vmatprep.subr.bf16.mxu0 %v4855_v21  ;;  %v4246_v41 = vpack.c.bf16 %v1183_v40, %v1182_v32  ;;  %v1407_v32 = vld [vmem:[%s6411_s3 + $0x288] sm:$0xff]  ;;  %v1408_v40 = vld [vmem:[%s6411_s3 + $0x290] sm:$0xff] }
 0x221   :  { %4168 = vmatpush3.bf16.msra.mxu1 %v4167_v44  ;;  %v1184_v44 = vld [vmem:[%s6411_s3 + $0x250] sm:$0xff] }
 0x222   :  { %4202 = vmatprep.subr.bf16.mxu1 %v4816_v8 }
 0x223   :  { %4120 = vmatpush3.bf16.msra.mxu0 %v4867_v25 }
 0x224   :  { %4122 = vmatprep.subr.bf16.mxu0 %v4893_v34 }
 0x227   :  { %4124 = vmatpush3.bf16.msra.mxu0 %v4906_v38 }
 0x228   :  { %4126 = vmatprep.subr.bf16.mxu0 %v4920_v43 }
 0x22b   :  { %4128 = vmatpush3.bf16.msra.mxu0 %v4945_v51 }
 0x22c   :  { %4130 = vmatprep.subr.bf16.mxu0 %v4959_v56 }
 0x22f   :  { %4132 = vmatpush3.bf16.msra.mxu0 %v4981_v63 }
 0x230   :  { %4134 = vmatprep.subr.bf16.mxu0 %v4995_v5 }
 0x233   :  { %4136 = vmatpush3.bf16.msra.mxu0 %v5023_v19 }
 0x234   :  { %4138 = vmatprep.subr.bf16.mxu0 %v5037_v27 }
 0x237   :  { %4140 = vmatpush3.bf16.msra.mxu0 %v5059_v36 }
 0x238   :  { %4142 = vmatprep.subr.bf16.mxu0 %v5070_v42 }
 0x23b   :  { %4144 = vmatpush3.bf16.msra.mxu0 %v5083_v47 }
 0x23c   :  { %4170 = vmatprep.subr.bf16.mxu0 %v4803_v3 }
 0x23e   :  { %936 = vmatmul.mubr.f32.vlgmr.msra.gmra.mrb[10].mxu0 %v799_v45  ;;  %v1030_v45 = vld [vmem:[%s6410_s0 + $0x88] sm:$0xff] }
 0x23f   :  { %4172 = vmatpush3.bf16.msra.mxu0 %v4814_v7  ;;  %1097 = vmatprep.mubr.f32.mxu0 %v1030_v45  ;;  %v1185_v45 = vld [vmem:[%s6411_s3 + $0x258] sm:$0xff] }
 0x240   :  { %4174 = vmatprep.subr.bf16.mxu0 %v4841_v16 }
 0x243   :  { %4176 = vmatpush3.bf16.msra.mxu0 %v4843_v17 }
 0x244   :  { %4178 = vmatprep.subr.bf16.mxu0 %v4869_v26 }
 0x247   :  { %4180 = vmatpush3.bf16.msra.mxu0 %v4891_v33 }
 0x248   :  { %4182 = vmatprep.subr.bf16.mxu0 %v4908_v39 }
 0x24b   :  { %4184 = vmatpush3.bf16.msra.mxu0 %v4935_v48 }
 0x24c   :  { %4186 = vmatprep.subr.bf16.mxu0 %v4947_v52 }
 0x24f   :  { %4188 = vmatpush3.bf16.msra.mxu0 %v4977_v62 }
 0x250   :  { %4190 = vmatprep.subr.bf16.mxu0 %v4983_v0 }
 0x253   :  { %4192 = vmatpush3.bf16.msra.mxu0 %v5013_v14 }
 0x254   :  { %4194 = vmatprep.subr.bf16.mxu0 %v5025_v20 }
 0x257   :  { %4196 = vmatpush3.bf16.msra.mxu0 %v5055_v35 }
 0x258   :  { %4198 = vmatprep.subr.bf16.mxu0 %v5061_v37 }
 0x25b   :  { %4200 = vmatpush3.bf16.msra.mxu0 %v5079_v46 }
 0x25c   :  { %4233 = vmatprep.subr.bf16.mxu0 %v4741_v61 }
 0x25e   :  { %1098 = vmatmul.mubr.f32.vlgmr.msra.gmra.mrb[12].mxu0 %v1029_v49  ;;  %v4249_v49 = vpack.c.bf16 %v1185_v45, %v1184_v44  ;;  %v1409_v44 = vld [vmem:[%s6411_s3 + $0x298] sm:$0xff] }
 0x25f   :  { %3674 = vmatprep.mubr.msk.f32.mxu0 %vm4742_vm0, %v4743_v53  ;;  %4235 = vmatpush3.bf16.msra.mxu0 %v4234_v11  ;;  %v4325_v45 = vpack.c.bf16 %v1409_v44, %v1408_v40 }
 0x260   :  { %4236 = vmatprep.subr.bf16.mxu0 %v4741_v61 }
 0x263   :  { %4238 = vmatpush3.bf16.msra.mxu0 %v4237_v15 }
 0x264   :  { %4239 = vmatprep.subr.bf16.mxu0 %v4741_v61 }
 0x267   :  { %4241 = vmatpush3.bf16.msra.mxu0 %v4240_v24 }
 0x268   :  { %4242 = vmatprep.subr.bf16.mxu0 %v4741_v61 }
 0x26b   :  { %4244 = vmatpush3.bf16.msra.mxu0 %v4243_v30  ;;  %v1406_v30 = vld [vmem:[%s6411_s3 + $0x280] sm:$0xff] }
 0x26c   :  { %4245 = vmatprep.subr.bf16.mxu0 %v4741_v61 }
 0x26f   :  { %4247 = vmatpush3.bf16.msra.mxu0 %v4246_v41  ;;  %v4322_v41 = vpack.c.bf16 %v1407_v32, %v1406_v30  ;;  %v1493_v30 = vld [vmem:[%s6410_s0 + $0xc0] sm:$0xff] }
 0x270   :  { %4248 = vmatprep.subr.bf16.mxu0 %v4741_v61 }
 0x273   :  { %4250 = vmatpush3.bf16.msra.mxu0 %v4249_v49  ;;  %v1410_v49 = vld [vmem:[%s6411_s3 + $0x2a0] sm:$0xff] }
 0x274   :  { %4251 = vmatprep.subr.bf16.mxu0 %v4741_v61 }
 0x2f1   :  { %v792_v50 = vpop.f32.mrb[8].mxu0 }
 0x2f2   :  { %v5495_v54 = vadd.f32 %v792_v50, %v5389_v18  ;;  %v3606_v55 = vpop.f32.mrb[9].mxu0  ;;  %v1031_v18 = vld [vmem:[%s6410_s0 + $0x90] sm:$0xff] }
 0x311   :  { %v2977_v58 = vpop.f32.mrb[10].mxu0 }
 0x312   :  { %v2978_v59 = vpop.f32.mrb[11].mxu0 }
 0x313   :  { %v2979_v60 = vadd.f32 %v2978_v59, %v2977_v58  ;;  %v1186_v58 = vld [vmem:[%s6411_s3 + $0x260] sm:$0xff]  ;;  %v1187_v59 = vld [vmem:[%s6411_s3 + $0x268] sm:$0xff] }
 0x315   :  { %v938_v1 = vadd.f32 %v2979_v60, %v868_v57  ;;  %v4252_v60 = vpack.c.bf16 %v1187_v59, %v1186_v58  ;;  %v1413_v58 = vld [vmem:[%s6411_s3 + $0x2b8] sm:$0xff] }
 0x317   :  { %v941_v2 = vmax.f32 %v938_v1, 0.0  ;;  %4253 = vmatpush3.bf16.msra.mxu0 %v4252_v60  ;;  %v1188_v1 = vld [vmem:[%s6411_s3 + $0x270] sm:$0xff]  ;;  %v1414_v60 = vld [vmem:[%s6411_s3 + $0x2c0] sm:$0xff] }
 0x318   :  { %4254 = vmatprep.subr.bf16.mxu0 %v4741_v61 }
 0x319   :  { %3640 = vmatmul.mubr.f32.vlgmr.msra.gmra.mrb[10].mxu1 %v941_v2  ;;  %v1189_v2 = vld [vmem:[%s6411_s3 + $0x278] sm:$0xff] }
 0x31a   :  { %4204 = vmatpush3.bf16.msra.mxu1 %v4828_v12  ;;  %1167 = vmatprep.mubr.f32.mxu1 %v1032_v4  ;;  %v4255_v4 = vpack.c.bf16 %v1189_v2, %v1188_v1  ;;  %v1415_v1 = vld [vmem:[%s6411_s3 + $0x2c8] sm:$0xff] }
 0x31b   :  { %4206 = vmatprep.subr.bf16.mxu1 %v4855_v21  ;;  %v4334_v2 = vpack.c.bf16 %v1415_v1, %v1414_v60  ;;  %v1639_v60 = vld [vmem:[%s6411_s3 + $0x308] sm:$0xff]  ;;  %v1640_v1 = vld [vmem:[%s6411_s3 + $0x310] sm:$0xff] }
 0x31c   :  { %4256 = vmatpush3.bf16.msra.mxu0 %v4255_v4  ;;  %v1416_v4 = vld [vmem:[%s6411_s3 + $0x2d0] sm:$0xff] }
 0x31d   :  { %4290 = vmatprep.subr.bf16.mxu0 %v4816_v8 }
 0x31e   :  { %4208 = vmatpush3.bf16.msra.mxu1 %v4867_v25 }
 0x31f   :  { %4210 = vmatprep.subr.bf16.mxu1 %v4893_v34 }
 0x322   :  { %4212 = vmatpush3.bf16.msra.mxu1 %v4906_v38 }
 0x323   :  { %4214 = vmatprep.subr.bf16.mxu1 %v4920_v43 }
 0x326   :  { %4216 = vmatpush3.bf16.msra.mxu1 %v4945_v51 }
 0x327   :  { %4218 = vmatprep.subr.bf16.mxu1 %v4959_v56 }
 0x32a   :  { %4220 = vmatpush3.bf16.msra.mxu1 %v4981_v63 }
 0x32b   :  { %4222 = vmatprep.subr.bf16.mxu1 %v4995_v5 }
 0x32e   :  { %4224 = vmatpush3.bf16.msra.mxu1 %v5023_v19 }
 0x32f   :  { %4226 = vmatprep.subr.bf16.mxu1 %v5037_v27 }
 0x331   :  { %v3029_v50 = vpop.f32.mrb[12].mxu0 }
 0x332   :  { %4228 = vmatpush3.bf16.msra.mxu1 %v5059_v36  ;;  %v3030_v55 = vpop.f32.mrb[13].mxu0 }
 0x333   :  { %4230 = vmatprep.subr.bf16.mxu1 %v5070_v42  ;;  %v3031_v57 = vadd.f32 %v3030_v55, %v3029_v50  ;;  %v1411_v50 = vld [vmem:[%s6411_s3 + $0x2a8] sm:$0xff] }
 0x334   :  { %v4328_v55 = vpack.c.bf16 %v1411_v50, %v1410_v49 }
 0x335   :  { %v1100_v13 = vadd.f32 %v3031_v57, %v5259_v31  ;;  %v1412_v57 = vld [vmem:[%s6411_s3 + $0x2b0] sm:$0xff] }
 0x336   :  { %4232 = vmatpush3.bf16.msra.mxu1 %v5083_v47  ;;  %v4331_v59 = vpack.c.bf16 %v1413_v58, %v1412_v57  ;;  %v1496_v58 = vld [vmem:[%s6410_s0 + $0xd8] sm:$0xff] }
 0x337   :  { %4258 = vmatprep.subr.bf16.mxu1 %v4803_v3 }
 0x339   :  { %1168 = vmatmul.mubr.f32.vlgmr.msra.gmra.mrb[12].mxu1 %v1031_v18  ;;  %v1262_v18 = vld [vmem:[%s6410_s0 + $0xa8] sm:$0xff] }
 0x33a   :  { %4260 = vmatpush3.bf16.msra.mxu1 %v4814_v7  ;;  %1329 = vmatprep.mubr.f32.mxu1 %v1262_v18  ;;  %v1417_v18 = vld [vmem:[%s6411_s3 + $0x2d8] sm:$0xff] }
 0x33b   :  { %4262 = vmatprep.subr.bf16.mxu1 %v4841_v16 }
 0x33e   :  { %4264 = vmatpush3.bf16.msra.mxu1 %v4843_v17 }
 0x33f   :  { %4266 = vmatprep.subr.bf16.mxu1 %v4869_v26 }
 0x342   :  { %4268 = vmatpush3.bf16.msra.mxu1 %v4891_v33 }
 0x343   :  { %4270 = vmatprep.subr.bf16.mxu1 %v4908_v39 }
 0x346   :  { %4272 = vmatpush3.bf16.msra.mxu1 %v4935_v48 }
 0x347   :  { %4274 = vmatprep.subr.bf16.mxu1 %v4947_v52 }
 0x34a   :  { %4276 = vmatpush3.bf16.msra.mxu1 %v4977_v62 }
 0x34b   :  { %4278 = vmatprep.subr.bf16.mxu1 %v4983_v0 }
 0x34e   :  { %4280 = vmatpush3.bf16.msra.mxu1 %v5013_v14 }
 0x34f   :  { %4282 = vmatprep.subr.bf16.mxu1 %v5025_v20 }
 0x352   :  { %4284 = vmatpush3.bf16.msra.mxu1 %v5055_v35 }
 0x353   :  { %4286 = vmatprep.subr.bf16.mxu1 %v5061_v37 }
 0x356   :  { %4288 = vmatpush3.bf16.msra.mxu1 %v5079_v46 }
 0x357   :  { %4321 = vmatprep.subr.bf16.mxu1 %v4741_v61 }
 0x359   :  { %1330 = vmatmul.mubr.f32.vlgmr.msra.gmra.mrb[14].mxu1 %v1261_v6  ;;  %v4337_v6 = vpack.c.bf16 %v1417_v18, %v1416_v4  ;;  %v1641_v4 = vld [vmem:[%s6411_s3 + $0x318] sm:$0xff] }
 0x35a   :  { %3709 = vmatprep.mubr.msk.f32.mxu1 %vm4742_vm0, %v4743_v53  ;;  %4323 = vmatpush3.bf16.msra.mxu1 %v4322_v41  ;;  %v4413_v18 = vpack.c.bf16 %v1641_v4, %v1640_v1 }
 0x35b   :  { %4324 = vmatprep.subr.bf16.mxu1 %v4741_v61 }
 0x35e   :  { %4326 = vmatpush3.bf16.msra.mxu1 %v4325_v45 }
 0x35f   :  { %4327 = vmatprep.subr.bf16.mxu1 %v4741_v61 }
 0x362   :  { %4329 = vmatpush3.bf16.msra.mxu1 %v4328_v55 }
 0x363   :  { %4330 = vmatprep.subr.bf16.mxu1 %v4741_v61 }
 0x366   :  { %4332 = vmatpush3.bf16.msra.mxu1 %v4331_v59  ;;  %v1638_v59 = vld [vmem:[%s6411_s3 + $0x300] sm:$0xff] }
 0x367   :  { %4333 = vmatprep.subr.bf16.mxu1 %v4741_v61 }
 0x36a   :  { %4335 = vmatpush3.bf16.msra.mxu1 %v4334_v2  ;;  %v4410_v2 = vpack.c.bf16 %v1639_v60, %v1638_v59  ;;  %v1725_v59 = vld [vmem:[%s6410_s0 + $0xe0] sm:$0xff] }
 0x36b   :  { %4336 = vmatprep.subr.bf16.mxu1 %v4741_v61 }
 0x36e   :  { %4338 = vmatpush3.bf16.msra.mxu1 %v4337_v6  ;;  %v1642_v6 = vld [vmem:[%s6411_s3 + $0x320] sm:$0xff] }
 0x36f   :  { %4339 = vmatprep.subr.bf16.mxu1 %v4741_v61 }
 0x3ec   :  { %v1024_v9 = vpop.f32.mrb[10].mxu1 }
 0x3ed   :  { %v5601_v10 = vadd.f32 %v1024_v9, %v5495_v54  ;;  %v3641_v11 = vpop.f32.mrb[11].mxu1  ;;  %v1263_v54 = vld [vmem:[%s6410_s0 + $0xb0] sm:$0xff] }
 0x40c   :  { %v3064_v15 = vpop.f32.mrb[12].mxu1 }
 0x40d   :  { %v3065_v22 = vpop.f32.mrb[13].mxu1 }
 0x40e   :  { %v3066_v23 = vadd.f32 %v3065_v22, %v3064_v15  ;;  %v1418_v15 = vld [vmem:[%s6411_s3 + $0x2e0] sm:$0xff]  ;;  %v1419_v22 = vld [vmem:[%s6411_s3 + $0x2e8] sm:$0xff] }
 0x410   :  { %v1170_v24 = vadd.f32 %v3066_v23, %v1100_v13  ;;  %v4340_v23 = vpack.c.bf16 %v1419_v22, %v1418_v15  ;;  %v1645_v15 = vld [vmem:[%s6411_s3 + $0x338] sm:$0xff] }
 0x412   :  { %v1173_v28 = vmax.f32 %v1170_v24, 0.0  ;;  %4341 = vmatpush3.bf16.msra.mxu1 %v4340_v23  ;;  %v1420_v24 = vld [vmem:[%s6411_s3 + $0x2f0] sm:$0xff]  ;;  %v1646_v23 = vld [vmem:[%s6411_s3 + $0x340] sm:$0xff] }
 0x413   :  { %4342 = vmatprep.subr.bf16.mxu1 %v4741_v61 }
 0x414   :  { %3675 = vmatmul.mubr.f32.vlgmr.msra.gmra.mrb[14].mxu0 %v1173_v28  ;;  %v1421_v28 = vld [vmem:[%s6411_s3 + $0x2f8] sm:$0xff] }
 0x415   :  { %4292 = vmatpush3.bf16.msra.mxu0 %v4828_v12  ;;  %1399 = vmatprep.mubr.f32.mxu0 %v1264_v29  ;;  %v4343_v29 = vpack.c.bf16 %v1421_v28, %v1420_v24  ;;  %v1647_v24 = vld [vmem:[%s6411_s3 + $0x348] sm:$0xff] }
 0x416   :  { %4294 = vmatprep.subr.bf16.mxu0 %v4855_v21  ;;  %v4422_v28 = vpack.c.bf16 %v1647_v24, %v1646_v23 }
 0x417   :  { %4344 = vmatpush3.bf16.msra.mxu1 %v4343_v29  ;;  %v1648_v29 = vld [vmem:[%s6411_s3 + $0x350] sm:$0xff] }
 0x418   :  { %4378 = vmatprep.subr.bf16.mxu1 %v4816_v8 }
 0x419   :  { %4296 = vmatpush3.bf16.msra.mxu0 %v4867_v25 }
 0x41a   :  { %4298 = vmatprep.subr.bf16.mxu0 %v4893_v34 }
 0x41d   :  { %4300 = vmatpush3.bf16.msra.mxu0 %v4906_v38 }
 0x41e   :  { %4302 = vmatprep.subr.bf16.mxu0 %v4920_v43 }
 0x421   :  { %4304 = vmatpush3.bf16.msra.mxu0 %v4945_v51 }
 0x422   :  { %4306 = vmatprep.subr.bf16.mxu0 %v4959_v56 }
 0x425   :  { %4308 = vmatpush3.bf16.msra.mxu0 %v4981_v63 }
 0x426   :  { %4310 = vmatprep.subr.bf16.mxu0 %v4995_v5 }
 0x429   :  { %4312 = vmatpush3.bf16.msra.mxu0 %v5023_v19 }
 0x42a   :  { %4314 = vmatprep.subr.bf16.mxu0 %v5037_v27 }
 0x42c   :  { %v3116_v9 = vpop.f32.mrb[14].mxu1 }
 0x42d   :  { %4316 = vmatpush3.bf16.msra.mxu0 %v5059_v36  ;;  %v3117_v11 = vpop.f32.mrb[15].mxu1 }
 0x42e   :  { %4318 = vmatprep.subr.bf16.mxu0 %v5070_v42  ;;  %v3118_v13 = vadd.f32 %v3117_v11, %v3116_v9  ;;  %v1643_v9 = vld [vmem:[%s6411_s3 + $0x328] sm:$0xff] }
 0x42f   :  { %v4416_v11 = vpack.c.bf16 %v1643_v9, %v1642_v6 }
 0x430   :  { %v1332_v44 = vadd.f32 %v3118_v13, %v5259_v31  ;;  %v1644_v13 = vld [vmem:[%s6411_s3 + $0x330] sm:$0xff] }
 0x431   :  { %4320 = vmatpush3.bf16.msra.mxu0 %v5083_v47  ;;  %v4419_v22 = vpack.c.bf16 %v1645_v15, %v1644_v13  ;;  %v1728_v15 = vld [vmem:[%s6410_s0 + $0xf8] sm:$0xff] }
 0x432   :  { %4346 = vmatprep.subr.bf16.mxu0 %v4803_v3 }
 0x434   :  { %1400 = vmatmul.mubr.f32.vlgmr.msra.gmra.mrb[16].mxu0 %v1263_v54  ;;  %v1494_v54 = vld [vmem:[%s6410_s0 + $0xc8] sm:$0xff] }
 0x435   :  { %4348 = vmatpush3.bf16.msra.mxu0 %v4814_v7  ;;  %1561 = vmatprep.mubr.f32.mxu0 %v1494_v54  ;;  %v1649_v54 = vld [vmem:[%s6411_s3 + $0x358] sm:$0xff] }
 0x436   :  { %4350 = vmatprep.subr.bf16.mxu0 %v4841_v16 }
 0x439   :  { %4352 = vmatpush3.bf16.msra.mxu0 %v4843_v17 }
 0x43a   :  { %4354 = vmatprep.subr.bf16.mxu0 %v4869_v26 }
 0x43d   :  { %4356 = vmatpush3.bf16.msra.mxu0 %v4891_v33 }
 0x43e   :  { %4358 = vmatprep.subr.bf16.mxu0 %v4908_v39 }
 0x441   :  { %4360 = vmatpush3.bf16.msra.mxu0 %v4935_v48 }
 0x442   :  { %4362 = vmatprep.subr.bf16.mxu0 %v4947_v52 }
 0x445   :  { %4364 = vmatpush3.bf16.msra.mxu0 %v4977_v62 }
 0x446   :  { %4366 = vmatprep.subr.bf16.mxu0 %v4983_v0 }
 0x449   :  { %4368 = vmatpush3.bf16.msra.mxu0 %v5013_v14 }
 0x44a   :  { %4370 = vmatprep.subr.bf16.mxu0 %v5025_v20 }
 0x44d   :  { %4372 = vmatpush3.bf16.msra.mxu0 %v5055_v35 }
 0x44e   :  { %4374 = vmatprep.subr.bf16.mxu0 %v5061_v37 }
 0x451   :  { %4376 = vmatpush3.bf16.msra.mxu0 %v5079_v46 }
 0x452   :  { %4409 = vmatprep.subr.bf16.mxu0 %v4741_v61 }
 0x454   :  { %1562 = vmatmul.mubr.f32.vlgmr.msra.gmra.mrb[18].mxu0 %v1493_v30  ;;  %v4425_v30 = vpack.c.bf16 %v1649_v54, %v1648_v29  ;;  %v1882_v29 = vld [vmem:[%s6411_s3 + $0x3e0] sm:$0xff]  ;;  %v1883_v54 = vld [vmem:[%s6411_s3 + $0x3e8] sm:$0xff] }
 0x455   :  { %3744 = vmatprep.mubr.msk.f32.mxu0 %vm4742_vm0, %v4743_v53  ;;  %4411 = vmatpush3.bf16.msra.mxu0 %v4410_v2 }
 0x456   :  { %4412 = vmatprep.subr.bf16.mxu0 %v4741_v61 }
 0x459   :  { %4414 = vmatpush3.bf16.msra.mxu0 %v4413_v18 }
 0x45a   :  { %4415 = vmatprep.subr.bf16.mxu0 %v4741_v61 }
 0x45d   :  { %4417 = vmatpush3.bf16.msra.mxu0 %v4416_v11 }
 0x45e   :  { %4418 = vmatprep.subr.bf16.mxu0 %v4741_v61 }
 0x461   :  { %4420 = vmatpush3.bf16.msra.mxu0 %v4419_v22 }
 0x462   :  { %4421 = vmatprep.subr.bf16.mxu0 %v4741_v61 }
 0x465   :  { %4423 = vmatpush3.bf16.msra.mxu0 %v4422_v28 }
 0x466   :  { %4424 = vmatprep.subr.bf16.mxu0 %v4741_v61 }
 0x469   :  { %4426 = vmatpush3.bf16.msra.mxu0 %v4425_v30  ;;  %v4516_v30 = vpack.c.bf16 %v1883_v54, %v1882_v29  ;;  %v2219_v29 = vld [vmem:[%s6413_s5 + $0xa8] sm:$0xff] }
 0x46a   :  { %4427 = vmatprep.subr.bf16.mxu0 %v4741_v61 }
 0x4e7   :  { %v1256_v32 = vpop.f32.mrb[14].mxu0 }
 0x4e8   :  { %v5707_v40 = vadd.f32 %v1256_v32, %v5601_v10  ;;  %v3676_v41 = vpop.f32.mrb[15].mxu0  ;;  %v1495_v10 = vld [vmem:[%s6410_s0 + $0xd0] sm:$0xff] }
 0x507   :  { %v3151_v45 = vpop.f32.mrb[16].mxu0 }
 0x508   :  { %v3152_v49 = vpop.f32.mrb[17].mxu0 }
 0x509   :  { %v3153_v50 = vadd.f32 %v3152_v49, %v3151_v45  ;;  %v1650_v45 = vld [vmem:[%s6411_s3 + $0x360] sm:$0xff]  ;;  %v1651_v49 = vld [vmem:[%s6411_s3 + $0x368] sm:$0xff] }
 0x50b   :  { %v1402_v55 = vadd.f32 %v3153_v50, %v1332_v44  ;;  %v4428_v50 = vpack.c.bf16 %v1651_v49, %v1650_v45  ;;  %v1958_v45 = vld [vmem:[%s6410_s0 + $0x108] sm:$0xff]  ;;  %v1957_v49 = vld [vmem:[%s6410_s0 + $0x100] sm:$0xff] }
 0x50d   :  { %v1405_v57 = vmax.f32 %v1402_v55, 0.0  ;;  %4429 = vmatpush3.bf16.msra.mxu0 %v4428_v50  ;;  %v1652_v55 = vld [vmem:[%s6411_s3 + $0x370] sm:$0xff] }
 0x50e   :  { %4430 = vmatprep.subr.bf16.mxu0 %v4741_v61 }
 0x50f   :  { %3710 = vmatmul.mubr.f32.vlgmr.msra.gmra.mrb[16].mxu1 %v1405_v57  ;;  %v1653_v57 = vld [vmem:[%s6411_s3 + $0x378] sm:$0xff] }
 0x510   :  { %4380 = vmatpush3.bf16.msra.mxu1 %v4828_v12  ;;  %1631 = vmatprep.mubr.f32.mxu1 %v1496_v58  ;;  %v4431_v58 = vpack.c.bf16 %v1653_v57, %v1652_v55 }
 0x511   :  { %4382 = vmatprep.subr.bf16.mxu1 %v4855_v21 }
 0x512   :  { %4432 = vmatpush3.bf16.msra.mxu0 %v4431_v58 }
 0x513   :  { %4466 = vmatprep.subr.bf16.mxu0 %v4816_v8 }
 0x514   :  { %4384 = vmatpush3.bf16.msra.mxu1 %v4867_v25 }
 0x515   :  { %4386 = vmatprep.subr.bf16.mxu1 %v4893_v34 }
 0x518   :  { %4388 = vmatpush3.bf16.msra.mxu1 %v4906_v38 }
 0x519   :  { %4390 = vmatprep.subr.bf16.mxu1 %v4920_v43 }
 0x51c   :  { %4392 = vmatpush3.bf16.msra.mxu1 %v4945_v51 }
 0x51d   :  { %4394 = vmatprep.subr.bf16.mxu1 %v4959_v56 }
 0x520   :  { %4396 = vmatpush3.bf16.msra.mxu1 %v4981_v63 }
 0x521   :  { %4398 = vmatprep.subr.bf16.mxu1 %v4995_v5 }
 0x524   :  { %4400 = vmatpush3.bf16.msra.mxu1 %v5023_v19 }
 0x525   :  { %4402 = vmatprep.subr.bf16.mxu1 %v5037_v27 }
 0x527   :  { %v3203_v32 = vpop.f32.mrb[18].mxu0 }
 0x528   :  { %4404 = vmatpush3.bf16.msra.mxu1 %v5059_v36  ;;  %v3204_v41 = vpop.f32.mrb[19].mxu0 }
 0x529   :  { %4406 = vmatprep.subr.bf16.mxu1 %v5070_v42  ;;  %v3205_v44 = vadd.f32 %v3204_v41, %v3203_v32  ;;  %v1884_v32 = vld [vmem:[%s6411_s3 + $0x3f0] sm:$0xff]  ;;  %v1885_v41 = vld [vmem:[%s6411_s3 + $0x3f8] sm:$0xff] }
 0x52b   :  { %v1564_v4 = vadd.f32 %v3205_v44, %v5259_v31  ;;  %v1727_v31 = vld [vmem:[%s6410_s0 + $0xf0] sm:$0xff]  ;;  %v4519_v44 = vpack.c.bf16 %v1885_v41, %v1884_v32  ;;  %v2218_v32 = vld [vmem:[%s6413_s5 + $0xa0] sm:$0xff] }
 0x52c   :  { %4408 = vmatpush3.bf16.msra.mxu1 %v5083_v47 }
 0x52d   :  { %4434 = vmatprep.subr.bf16.mxu1 %v4803_v3 }
 0x52f   :  { %1632 = vmatmul.mubr.f32.vlgmr.msra.gmra.mrb[18].mxu1 %v1495_v10  ;;  %v1726_v10 = vld [vmem:[%s6410_s0 + $0xe8] sm:$0xff] }
 0x530   :  { %4436 = vmatpush3.bf16.msra.mxu1 %v4814_v7  ;;  %1793 = vmatprep.mubr.f32.mxu1 %v1726_v10 }
 0x531   :  { %4438 = vmatprep.subr.bf16.mxu1 %v4841_v16 }
 0x534   :  { %4440 = vmatpush3.bf16.msra.mxu1 %v4843_v17 }
 0x535   :  { %4442 = vmatprep.subr.bf16.mxu1 %v4869_v26 }
 0x538   :  { %4444 = vmatpush3.bf16.msra.mxu1 %v4891_v33 }
 0x539   :  { %4446 = vmatprep.subr.bf16.mxu1 %v4908_v39 }
 0x53c   :  { %4448 = vmatpush3.bf16.msra.mxu1 %v4935_v48 }
 0x53d   :  { %4450 = vmatprep.subr.bf16.mxu1 %v4947_v52 }
 0x540   :  { %4452 = vmatpush3.bf16.msra.mxu1 %v4977_v62 }
 0x541   :  { %4454 = vmatprep.subr.bf16.mxu1 %v4983_v0 }
 0x544   :  { %4456 = vmatpush3.bf16.msra.mxu1 %v5013_v14 }
 0x545   :  { %4458 = vmatprep.subr.bf16.mxu1 %v5025_v20 }
 0x548   :  { %4460 = vmatpush3.bf16.msra.mxu1 %v5055_v35 }
 0x549   :  { %4462 = vmatprep.subr.bf16.mxu1 %v5061_v37 }
 0x54c   :  { %4464 = vmatpush3.bf16.msra.mxu1 %v5079_v46 }
 0x54d   :  { %4497 = vmatprep.subr.bf16.mxu1 %v4741_v61 }
 0x54f   :  { %1794 = vmatmul.mubr.f32.vlgmr.msra.gmra.mrb[20].mxu1 %v1725_v59 }
 0x550   :  { %3779 = vmatprep.mubr.msk.f32.mxu1 %vm4742_vm0, %v4743_v53 }
 0x5e2   :  { %v1488_v60 = vpop.f32.mrb[16].mxu1 }
 0x5e3   :  { %v5813_v1 = vadd.f32 %v1488_v60, %v5707_v40  ;;  %v3711_v2 = vpop.f32.mrb[17].mxu1  ;;  %v1881_v40 = vld [vmem:[%s6411_s3 + $0x3d8] sm:$0xff] }
 0x602   :  { %v3238_v18 = vpop.f32.mrb[18].mxu1 }
 0x603   :  { %v3239_v6 = vpop.f32.mrb[19].mxu1 }
 0x604   :  { %v3240_v9 = vadd.f32 %v3239_v6, %v3238_v18  ;;  %v1960_v18 = vld [vmem:[%s6410_s0 + $0x118] sm:$0xff]  ;;  %v2112_v6 = vld [vmem:[%s6411_s3 + $0x450] sm:$0xff] }
 0x606   :  { %v1634_v11 = vadd.f32 %v3240_v9, %v1564_v4  ;;  %v2113_v9 = vld [vmem:[%s6411_s3 + $0x458] sm:$0xff] }
 0x608   :  { %v1637_v13 = vmax.f32 %v1634_v11, 0.0  ;;  %v4601_v11 = vpack.c.bf16 %v2113_v9, %v2112_v6  ;;  %v2200_v6 = vld [vmem:[%s6413_s5 + $0x10] sm:$0xff] }
 0x609   :  { %v2204_v9 = vld [vmem:[%s6413_s5 + $0x30] sm:$0xff] }
 0x60a   :  { %3745 = vmatmul.mubr.f32.vlgmr.msra.gmra.mrb[20].mxu0 %v1637_v13 }
 0x60b   :  { %4468 = vmatpush3.bf16.msra.mxu0 %v4828_v12  ;;  %1863 = vmatprep.mubr.f32.mxu0 %v1728_v15 }
 0x60c   :  { %4470 = vmatprep.subr.bf16.mxu0 %v4855_v21 }
 0x60f   :  { %4472 = vmatpush3.bf16.msra.mxu0 %v4867_v25 }
 0x610   :  { %4474 = vmatprep.subr.bf16.mxu0 %v4893_v34 }
 0x613   :  { %4476 = vmatpush3.bf16.msra.mxu0 %v4906_v38 }
 0x614   :  { %4478 = vmatprep.subr.bf16.mxu0 %v4920_v43 }
 0x617   :  { %4480 = vmatpush3.bf16.msra.mxu0 %v4945_v51 }
 0x618   :  { %4482 = vmatprep.subr.bf16.mxu0 %v4959_v56 }
 0x61b   :  { %4484 = vmatpush3.bf16.msra.mxu0 %v4981_v63 }
 0x61c   :  { %4486 = vmatprep.subr.bf16.mxu0 %v4995_v5 }
 0x61f   :  { %4488 = vmatpush3.bf16.msra.mxu0 %v5023_v19 }
 0x620   :  { %4490 = vmatprep.subr.bf16.mxu0 %v5037_v27 }
 0x622   :  { %v3290_v23 = vpop.f32.mrb[20].mxu1 }
 0x623   :  { %4492 = vmatpush3.bf16.msra.mxu0 %v5059_v36  ;;  %v3291_v24 = vpop.f32.mrb[21].mxu1 }
 0x624   :  { %4494 = vmatprep.subr.bf16.mxu0 %v5070_v42  ;;  %v3292_v28 = vadd.f32 %v3291_v24, %v3290_v23  ;;  %v2210_v23 = vld [vmem:[%s6413_s5 + $0x60] sm:$0xff] }
 0x627   :  { %4496 = vmatpush3.bf16.msra.mxu0 %v5083_v47 }
 0x628   :  { %4522 = vmatprep.subr.bf16.mxu0 %v4803_v3  ;;  %v1870_v3 = vld [vmem:[%s6411_s3 + $0x380] sm:$0xff] }
 0x62a   :  { %1864 = vmatmul.mubr.f32.vlgmr.msra.gmra.mrb[22].mxu0 %v1727_v31 }
 0x62b   :  { %4524 = vmatpush3.bf16.msra.mxu0 %v4814_v7  ;;  %v1871_v7 = vld [vmem:[%s6411_s3 + $0x388] sm:$0xff]  ;;  %2025 = vmatprep.mubr.f32.mxu0 %v1958_v45 }
 0x62c   :  { %4526 = vmatprep.subr.bf16.mxu0 %v4841_v16  ;;  %v1872_v16 = vld [vmem:[%s6411_s3 + $0x390] sm:$0xff]  ;;  %v2227_v45 = vld [vmem:[%s6413_s5 + $0xe8] sm:$0xff] }
 0x62f   :  { %4528 = vmatpush3.bf16.msra.mxu0 %v4843_v17  ;;  %v4498_v17 = vpack.c.bf16 %v1871_v7, %v1870_v3  ;;  %v2114_v3 = vld [vmem:[%s6411_s3 + $0x460] sm:$0xff]  ;;  %v2115_v7 = vld [vmem:[%s6411_s3 + $0x468] sm:$0xff] }
 0x630   :  { %4530 = vmatprep.subr.bf16.mxu0 %v4869_v26  ;;  %v1873_v26 = vld [vmem:[%s6411_s3 + $0x398] sm:$0xff] }
 0x631   :  { %4499 = vmatpush3.bf16.msra.mxu1 %v4498_v17  ;;  %v2116_v17 = vld [vmem:[%s6411_s3 + $0x470] sm:$0xff] }
 0x632   :  { %4500 = vmatprep.subr.bf16.mxu1 %v4741_v61 }
 0x633   :  { %4532 = vmatpush3.bf16.msra.mxu0 %v4891_v33  ;;  %v4501_v33 = vpack.c.bf16 %v1873_v26, %v1872_v16  ;;  %v4604_v16 = vpack.c.bf16 %v2115_v7, %v2114_v3  ;;  %v2117_v26 = vld [vmem:[%s6411_s3 + $0x478] sm:$0xff]  ;;  %v2208_v3 = vld [vmem:[%s6413_s5 + $0x50] sm:$0xff] }
 0x634   :  { %4534 = vmatprep.subr.bf16.mxu0 %v4908_v39  ;;  %v1874_v39 = vld [vmem:[%s6411_s3 + $0x3a0] sm:$0xff]  ;;  %v2212_v7 = vld [vmem:[%s6413_s5 + $0x70] sm:$0xff] }
 0x635   :  { %4502 = vmatpush3.bf16.msra.mxu1 %v4501_v33  ;;  %v4607_v33 = vpack.c.bf16 %v2117_v26, %v2116_v17  ;;  %v2221_v17 = vld [vmem:[%s6413_s5 + $0xb8] sm:$0xff]  ;;  %v4647_v26 = vpack.c.bf16 %v2212_v7, %v2208_v3 }
 0x636   :  { %4503 = vmatprep.subr.bf16.mxu1 %v4741_v61  ;;  %v2449_v3 = vld [vmem:[%s6414_s7 + $0x98] sm:$0xff] }
 0x637   :  { %4536 = vmatpush3.bf16.msra.mxu0 %v4935_v48  ;;  %v1875_v48 = vld [vmem:[%s6411_s3 + $0x3a8] sm:$0xff]  ;;  %v2481_v7 = vld [vmem:[%s6414_s7 + $0x198] sm:$0xff] }
 0x638   :  { %4538 = vmatprep.subr.bf16.mxu0 %v4947_v52  ;;  %v4504_v52 = vpack.c.bf16 %v1875_v48, %v1874_v39  ;;  %v2199_v39 = vld [vmem:[%s6413_s5 + $0x8] sm:$0xff] }
 0x639   :  { %v2203_v48 = vld [vmem:[%s6413_s5 + $0x28] sm:$0xff] }
 0x63a   :  { %4505 = vmatpush3.bf16.msra.mxu1 %v4504_v52  ;;  %v4609_v52 = vpack.c.bf16 %v2203_v48, %v2199_v39  ;;  %v2216_v39 = vld [vmem:[%s6413_s5 + $0x90] sm:$0xff] }
 0x63b   :  { %4540 = vmatpush3.bf16.msra.mxu0 %v4977_v62  ;;  %v1876_v62 = vld [vmem:[%s6411_s3 + $0x3b0] sm:$0xff]  ;;  %4506 = vmatprep.subr.bf16.mxu1 %v4741_v61 }
 0x63c   :  { %4542 = vmatprep.subr.bf16.mxu0 %v4983_v0  ;;  %v1877_v0 = vld [vmem:[%s6411_s3 + $0x3b8] sm:$0xff]  ;;  %v2220_v48 = vld [vmem:[%s6413_s5 + $0xb0] sm:$0xff] }
 0x63f   :  { %4544 = vmatpush3.bf16.msra.mxu0 %v5013_v14  ;;  %v4507_v14 = vpack.c.bf16 %v1877_v0, %v1876_v62  ;;  %v2205_v62 = vld [vmem:[%s6413_s5 + $0x38] sm:$0xff]  ;;  %v2198_v0 = vld [vmem:[%s6413_s5] sm:$0xff] }
 0x640   :  { %4546 = vmatprep.subr.bf16.mxu0 %v5025_v20  ;;  %v1878_v20 = vld [vmem:[%s6411_s3 + $0x3c0] sm:$0xff] }
 0x641   :  { %4508 = vmatpush3.bf16.msra.mxu1 %v4507_v14  ;;  %v2202_v14 = vld [vmem:[%s6413_s5 + $0x20] sm:$0xff] }
 0x642   :  { %4509 = vmatprep.subr.bf16.mxu1 %v4741_v61 }
 0x643   :  { %4548 = vmatpush3.bf16.msra.mxu0 %v5055_v35  ;;  %v1879_v35 = vld [vmem:[%s6411_s3 + $0x3c8] sm:$0xff] }
 0x644   :  { %4550 = vmatprep.subr.bf16.mxu0 %v5061_v37  ;;  %v4510_v37 = vpack.c.bf16 %v1879_v35, %v1878_v20  ;;  %v4611_v35 = vpack.c.bf16 %v2202_v14, %v2198_v0  ;;  %v2224_v0 = vld [vmem:[%s6413_s5 + $0xd0] sm:$0xff] }
 0x645   :  { %v2228_v14 = vld [vmem:[%s6413_s5 + $0xf0] sm:$0xff] }
 0x646   :  { %4511 = vmatpush3.bf16.msra.mxu1 %v4510_v37  ;;  %v2207_v37 = vld [vmem:[%s6413_s5 + $0x48] sm:$0xff] }
 0x647   :  { %4552 = vmatpush3.bf16.msra.mxu0 %v5079_v46  ;;  %v1880_v46 = vld [vmem:[%s6411_s3 + $0x3d0] sm:$0xff]  ;;  %4512 = vmatprep.subr.bf16.mxu1 %v4741_v61 }
 0x648   :  { %4585 = vmatprep.subr.bf16.mxu0 %v4741_v61  ;;  %v4513_v22 = vpack.c.bf16 %v1881_v40, %v1880_v46  ;;  %v2211_v46 = vld [vmem:[%s6413_s5 + $0x68] sm:$0xff] }
 0x649   :  { %v4613_v40 = vpack.c.bf16 %v2211_v46, %v2207_v37  ;;  %v4655_v37 = vpack.c.bf16 %v2228_v14, %v2224_v0  ;;  %v2450_v0 = vld [vmem:[%s6414_s7 + $0xa0] sm:$0xff]  ;;  %v2451_v14 = vld [vmem:[%s6414_s7 + $0xa8] sm:$0xff] }
 0x64a   :  { %4514 = vmatpush3.bf16.msra.mxu1 %v4513_v22  ;;  %2026 = vmatmul.mubr.f32.vlgmr.msra.gmra.mrb[24].mxu0 %v1957_v49  ;;  %v2206_v22 = vld [vmem:[%s6413_s5 + $0x40] sm:$0xff] }
 0x64b   :  { %4515 = vmatprep.subr.bf16.mxu1 %v4741_v61  ;;  %3814 = vmatprep.mubr.msk.f32.mxu0 %vm4742_vm0, %v4743_v53  ;;  %v4615_v24 = vpack.c.bf16 %v2210_v23, %v2206_v22  ;;  %v2236_v22 = vld [vmem:[%s6413_s5 + $0x130] sm:$0xff]  ;;  %v2241_v23 = vld [vmem:[%s6413_s5 + $0x158] sm:$0xff] }
 0x64e   :  { %4517 = vmatpush3.bf16.msra.mxu1 %v4516_v30  ;;  %v2214_v30 = vld [vmem:[%s6413_s5 + $0x80] sm:$0xff] }
 0x64f   :  { %4518 = vmatprep.subr.bf16.mxu1 %v4741_v61  ;;  %v4619_v41 = vpack.c.bf16 %v2218_v32, %v2214_v30  ;;  %v2244_v30 = vld [vmem:[%s6413_s5 + $0x170] sm:$0xff]  ;;  %v2249_v32 = vld [vmem:[%s6413_s5 + $0x198] sm:$0xff] }
 0x652   :  { %4520 = vmatpush3.bf16.msra.mxu1 %v4519_v44  ;;  %v2223_v44 = vld [vmem:[%s6413_s5 + $0xc8] sm:$0xff] }
 0x653   :  { %4554 = vmatprep.subr.bf16.mxu1 %v4816_v8  ;;  %v5924_v8 = vld [vmem:[%s6412_s2] ss:$0 sm:$0xff]  ;;  %v4621_v49 = vpack.c.bf16 %v2227_v45, %v2223_v44 }
 0x654   :  { %v1796_v58 = vadd.f32 %v5924_v8, %v3292_v28  ;;  %v2215_v28 = vld [vmem:[%s6413_s5 + $0x88] sm:$0xff] }
 0x655   :  { %v4617_v54 = vpack.c.bf16 %v2219_v29, %v2215_v28 }
 0x6dd   :  { %v1720_v50 = vpop.f32.mrb[20].mxu0 }
 0x6de   :  { %v5919_v55 = vadd.f32 %v1720_v50, %v5813_v1  ;;  %v3746_v57 = vpop.f32.mrb[21].mxu0  ;;  %v2222_v50 = vld [vmem:[%s6413_s5 + $0xc0] sm:$0xff] }
 0x6df   :  { %v2226_v57 = vld [vmem:[%s6413_s5 + $0xe0] sm:$0xff] }
 0x6fd   :  { %v3325_v10 = vpop.f32.mrb[22].mxu0 }
 0x6fe   :  { %v3326_v59 = vpop.f32.mrb[23].mxu0 }
 0x6ff   :  { %v3327_v60 = vadd.f32 %v3326_v59, %v3325_v10  ;;  %v2231_v10 = vld [vmem:[%s6413_s5 + $0x108] sm:$0xff] }
 0x700   :  { %v2235_v59 = vld [vmem:[%s6413_s5 + $0x128] sm:$0xff] }
 0x701   :  { %v1866_v2 = vadd.f32 %v3327_v60, %v1796_v58  ;;  %v4623_v58 = vpack.c.bf16 %v2226_v57, %v2222_v50  ;;  %v4625_v60 = vpack.c.bf16 %v2235_v59, %v2231_v10  ;;  %v2250_v50 = vld [vmem:[%s6413_s5 + $0x1a0] sm:$0xff]  ;;  %v2248_v57 = vld [vmem:[%s6413_s5 + $0x190] sm:$0xff] }
 0x702   :  { %v2252_v10 = vld [vmem:[%s6413_s5 + $0x1b0] sm:$0xff] }
 0x703   :  { %v1869_v4 = vmax.f32 %v1866_v2, 0.0  ;;  %v2230_v2 = vld [vmem:[%s6413_s5 + $0x100] sm:$0xff]  ;;  %v4667_v59 = vpack.c.bf16 %v2252_v10, %v2248_v57  ;;  %v2468_v10 = vld [vmem:[%s6414_s7 + $0x130] sm:$0xff] }
 0x705   :  { %3780 = vmatmul.mubr.f32.vlgmr.msra.gmra.mrb[22].mxu1 %v1869_v4  ;;  %v2234_v4 = vld [vmem:[%s6413_s5 + $0x120] sm:$0xff] }
 0x706   :  { %4556 = vmatpush3.bf16.msra.mxu1 %v4828_v12  ;;  %2095 = vmatprep.mubr.f32.mxu1 %v1960_v18  ;;  %v1959_v12 = vld [vmem:[%s6410_s0 + $0x110] sm:$0xff]  ;;  %v4627_v18 = vpack.c.bf16 %v2234_v4, %v2230_v2  ;;  %v2259_v2 = vld [vmem:[%s6413_s5 + $0x1e8] sm:$0xff]  ;;  %v2257_v4 = vld [vmem:[%s6413_s5 + $0x1d8] sm:$0xff] }
 0x707   :  { %4558 = vmatprep.subr.bf16.mxu1 %v4855_v21  ;;  %v2102_v21 = vld [vmem:[%s6411_s3 + $0x400] sm:$0xff] }
 0x70a   :  { %4560 = vmatpush3.bf16.msra.mxu1 %v4867_v25  ;;  %v2103_v25 = vld [vmem:[%s6411_s3 + $0x408] sm:$0xff] }
 0x70b   :  { %4562 = vmatprep.subr.bf16.mxu1 %v4893_v34  ;;  %v2104_v34 = vld [vmem:[%s6411_s3 + $0x410] sm:$0xff] }
 0x70e   :  { %4564 = vmatpush3.bf16.msra.mxu1 %v4906_v38  ;;  %v4586_v38 = vpack.c.bf16 %v2103_v25, %v2102_v21  ;;  %v2243_v21 = vld [vmem:[%s6413_s5 + $0x168] sm:$0xff] }
 0x70f   :  { %4566 = vmatprep.subr.bf16.mxu1 %v4920_v43  ;;  %v2105_v43 = vld [vmem:[%s6411_s3 + $0x418] sm:$0xff] }
 0x710   :  { %4587 = vmatpush3.bf16.msra.mxu0 %v4586_v38  ;;  %v2242_v38 = vld [vmem:[%s6413_s5 + $0x160] sm:$0xff] }
 0x711   :  { %4588 = vmatprep.subr.bf16.mxu0 %v4741_v61 }
 0x712   :  { %4568 = vmatpush3.bf16.msra.mxu1 %v4945_v51  ;;  %v4589_v51 = vpack.c.bf16 %v2105_v43, %v2104_v34  ;;  %v2238_v34 = vld [vmem:[%s6413_s5 + $0x140] sm:$0xff] }
 0x713   :  { %4570 = vmatprep.subr.bf16.mxu1 %v4959_v56  ;;  %v2106_v56 = vld [vmem:[%s6411_s3 + $0x420] sm:$0xff]  ;;  %v4631_v43 = vpack.c.bf16 %v2242_v38, %v2238_v34  ;;  %v2256_v38 = vld [vmem:[%s6413_s5 + $0x1d0] sm:$0xff] }
 0x714   :  { %4590 = vmatpush3.bf16.msra.mxu0 %v4589_v51  ;;  %v2247_v51 = vld [vmem:[%s6413_s5 + $0x188] sm:$0xff]  ;;  %v2258_v34 = vld [vmem:[%s6413_s5 + $0x1e0] sm:$0xff] }
 0x715   :  { %4591 = vmatprep.subr.bf16.mxu0 %v4741_v61 }
 0x716   :  { %4572 = vmatpush3.bf16.msra.mxu1 %v4981_v63  ;;  %v2107_v63 = vld [vmem:[%s6411_s3 + $0x428] sm:$0xff] }
 0x717   :  { %4574 = vmatprep.subr.bf16.mxu1 %v4995_v5  ;;  %v4592_v5 = vpack.c.bf16 %v2107_v63, %v2106_v56  ;;  %v2251_v56 = vld [vmem:[%s6413_s5 + $0x1a8] sm:$0xff] }
 0x718   :  { %v4633_v63 = vpack.c.bf16 %v2251_v56, %v2247_v51 }
 0x719   :  { %4593 = vmatpush3.bf16.msra.mxu0 %v4592_v5 }
 0x71a   :  { %4576 = vmatpush3.bf16.msra.mxu1 %v5023_v19  ;;  %v2108_v19 = vld [vmem:[%s6411_s3 + $0x430] sm:$0xff]  ;;  %4594 = vmatprep.subr.bf16.mxu0 %v4741_v61 }
 0x71b   :  { %4578 = vmatprep.subr.bf16.mxu1 %v5037_v27  ;;  %v2109_v27 = vld [vmem:[%s6411_s3 + $0x438] sm:$0xff] }
 0x71d   :  { %v3377_v13 = vpop.f32.mrb[24].mxu0 }
 0x71e   :  { %4580 = vmatpush3.bf16.msra.mxu1 %v5059_v36  ;;  %v4595_v36 = vpack.c.bf16 %v2109_v27, %v2108_v19  ;;  %v3378_v15 = vpop.f32.mrb[25].mxu0 }
 0x71f   :  { %4582 = vmatprep.subr.bf16.mxu1 %v5070_v42  ;;  %v2110_v42 = vld [vmem:[%s6411_s3 + $0x440] sm:$0xff]  ;;  %v5991_v31 = vadd.f32 %v3378_v15, %v3377_v13  ;;  %v4643_v13 = vpack.c.bf16 %v2204_v9, %v2200_v6 }
 0x720   :  { %4596 = vmatpush3.bf16.msra.mxu0 %v4595_v36  ;;  %v2647_v6 = vld [vmem:[%s6415_s4] ss:$0 sm:$0xff] }
 0x721   :  { %4597 = vmatprep.subr.bf16.mxu0 %v4741_v61  ;;  %v2028_v36 = vadd.f32 %v5924_v8, %v5991_v31  ;;  %v2430_v9 = vld [vmem:[%s6414_s7] sm:$0xff] }
 0x722   :  { %4584 = vmatpush3.bf16.msra.mxu1 %v5083_v47  ;;  %v2111_v47 = vld [vmem:[%s6411_s3 + $0x448] sm:$0xff] }
 0x723   :  { %v4598_v1 = vpack.c.bf16 %v2111_v47, %v2110_v42  ;;  %4610 = vmatprep.subr.bf16.mxu1 %v4609_v52  ;;  %v2229_v52 = vld [vmem:[%s6413_s5 + $0xf8] sm:$0xff] }
 0x725   :  { %2096 = vmatmul.mubr.f32.vlgmr.msra.gmra.mrb[24].mxu1 %v1959_v12  ;;  %4599 = vmatpush3.bf16.msra.mxu0 %v4598_v1  ;;  %v2239_v12 = vld [vmem:[%s6413_s5 + $0x148] sm:$0xff] }
 0x726   :  { %2348 = vmatprep.mubr.f32.mxu1 %v4743_v53  ;;  %4600 = vmatprep.subr.bf16.mxu0 %v4741_v61  ;;  %v4629_v25 = vpack.c.bf16 %v2243_v21, %v2239_v12  ;;  %v2261_v12 = vld [vmem:[%s6413_s5 + $0x1f8] sm:$0xff]  ;;  %v2254_v21 = vld [vmem:[%s6413_s5 + $0x1c0] sm:$0xff] }
 0x727   :  { %4612 = vmatpush1.bf16.msra.mxu1 %v4611_v35  ;;  %v2237_v35 = vld [vmem:[%s6413_s5 + $0x138] sm:$0xff]  ;;  %v4639_v51 = vpack.c.bf16 %v2258_v34, %v2254_v21  ;;  %v2439_v34 = vld [vmem:[%s6414_s7 + $0x48] sm:$0xff] }
 0x728   :  { %4614 = vmatprep.subr.bf16.mxu1 %v4613_v40  ;;  %v2232_v40 = vld [vmem:[%s6413_s5 + $0x110] sm:$0xff] }
 0x729   :  { %4602 = vmatpush3.bf16.msra.mxu0 %v4601_v11  ;;  %v2213_v11 = vld [vmem:[%s6413_s5 + $0x78] sm:$0xff]  ;;  %v4659_v28 = vpack.c.bf16 %v2236_v22, %v2232_v40  ;;  %v2434_v40 = vld [vmem:[%s6414_s7 + $0x20] sm:$0xff]  ;;  %v2435_v22 = vld [vmem:[%s6414_s7 + $0x28] sm:$0xff] }
 0x72a   :  { %4603 = vmatprep.subr.bf16.mxu0 %v4741_v61 }
 0x72b   :  { %4616 = vmatpush1.bf16.msra.mxu1 %v4615_v24  ;;  %v2245_v24 = vld [vmem:[%s6413_s5 + $0x178] sm:$0xff] }
 0x72c   :  { %4618 = vmatprep.subr.bf16.mxu1 %v4617_v54  ;;  %v4661_v29 = vpack.c.bf16 %v2245_v24, %v2241_v23  ;;  %v2240_v54 = vld [vmem:[%s6413_s5 + $0x150] sm:$0xff]  ;;  %v4681_v23 = vpack.c.bf16 %v2451_v14, %v2450_v0 }
 0x72d   :  { %4605 = vmatpush3.bf16.msra.mxu0 %v4604_v16  ;;  %v2217_v16 = vld [vmem:[%s6413_s5 + $0x98] sm:$0xff]  ;;  %v4663_v44 = vpack.c.bf16 %v2244_v30, %v2240_v54  ;;  %v2452_v54 = vld [vmem:[%s6414_s7 + $0xb0] sm:$0xff] }
 0x72e   :  { %4606 = vmatprep.subr.bf16.mxu0 %v4741_v61  ;;  %v2201_v61 = vld [vmem:[%s6413_s5 + $0x18] sm:$0xff]  ;;  %v2492_v0 = vld [vmem:[%s6414_s7 + $0x1f0] sm:$0xff] }
 0x72f   :  { %v4641_v20 = vpack.c.bf16 %v2205_v62, %v2201_v61  ;;  %4620 = vmatpush1.bf16.msra.mxu1 %v4619_v41  ;;  %v2225_v61 = vld [vmem:[%s6413_s5 + $0xd8] sm:$0xff] }
 0x730   :  { %4622 = vmatprep.subr.bf16.mxu1 %v4621_v49  ;;  %v4653_v62 = vpack.c.bf16 %v2229_v52, %v2225_v61  ;;  %v2253_v41 = vld [vmem:[%s6413_s5 + $0x1b8] sm:$0xff]  ;;  %v2246_v49 = vld [vmem:[%s6413_s5 + $0x180] sm:$0xff] }
 0x731   :  { %4608 = vmatpush3.bf16.msra.mxu0 %v4607_v33  ;;  %v4649_v33 = vpack.c.bf16 %v2221_v17, %v2217_v16  ;;  %v4665_v45 = vpack.c.bf16 %v2253_v41, %v2249_v32  ;;  %v2453_v30 = vld [vmem:[%s6414_s7 + $0xb8] sm:$0xff]  ;;  %v2484_v32 = vld [vmem:[%s6414_s7 + $0x1b0] sm:$0xff] }
 0x732   :  { %4642 = vmatprep.subr.bf16.mxu0 %v4641_v20  ;;  %v2233_v20 = vld [vmem:[%s6413_s5 + $0x118] sm:$0xff]  ;;  %v4685_v57 = vpack.c.bf16 %v2453_v30, %v2452_v54 }
 0x733   :  { %4624 = vmatpush1.bf16.msra.mxu1 %v4623_v58  ;;  %v4657_v46 = vpack.c.bf16 %v2237_v35, %v2233_v20  ;;  %v4635_v58 = vpack.c.bf16 %v2250_v50, %v2246_v49  ;;  %v2482_v20 = vld [vmem:[%s6414_s7 + $0x1a0] sm:$0xff]  ;;  %v2483_v35 = vld [vmem:[%s6414_s7 + $0x1a8] sm:$0xff]  ;;  %v2485_v41 = vld [vmem:[%s6414_s7 + $0x1b8] sm:$0xff] }
 0x734   :  { %4626 = vmatprep.subr.bf16.mxu1 %v4625_v60  ;;  %v2255_v60 = vld [vmem:[%s6413_s5 + $0x1c8] sm:$0xff]  ;;  %v4713_v24 = vpack.c.bf16 %v2483_v35, %v2482_v20  ;;  %v2436_v49 = vld [vmem:[%s6414_s7 + $0x30] sm:$0xff]  ;;  %v2437_v50 = vld [vmem:[%s6414_s7 + $0x38] sm:$0xff] }
 0x735   :  { %v2493_v20 = vld [vmem:[%s6414_s7 + $0x1f8] sm:$0xff]  ;;  %v2444_v35 = vld [vmem:[%s6414_s7 + $0x70] sm:$0xff] }
 0x737   :  { %4628 = vmatpush1.bf16.msra.mxu1 %v4627_v18  ;;  %v4637_v18 = vpack.c.bf16 %v2259_v2, %v2255_v60  ;;  %v2454_v60 = vld [vmem:[%s6414_s7 + $0xc0] sm:$0xff]  ;;  %v2455_v2 = vld [vmem:[%s6414_s7 + $0xc8] sm:$0xff] }
 0x738   :  { %4630 = vmatprep.subr.bf16.mxu1 %v4629_v25  ;;  %v4669_v25 = vpack.c.bf16 %v2261_v12, %v2257_v4  ;;  %v2486_v4 = vld [vmem:[%s6414_s7 + $0x1c0] sm:$0xff]  ;;  %v4687_v12 = vpack.c.bf16 %v2437_v50, %v2436_v49 }
 0x73b   :  { %4632 = vmatpush1.bf16.msra.mxu1 %v4631_v43  ;;  %v2260_v43 = vld [vmem:[%s6413_s5 + $0x1f0] sm:$0xff] }
 0x73c   :  { %4634 = vmatprep.subr.bf16.mxu1 %v4633_v63  ;;  %v4671_v56 = vpack.c.bf16 %v2260_v43, %v2256_v38  ;;  %v2446_v63 = vld [vmem:[%s6414_s7 + $0x80] sm:$0xff]  ;;  %v4689_v38 = vpack.c.bf16 %v2455_v2, %v2454_v60 }
 0x73f   :  { %4636 = vmatpush1.bf16.msra.mxu1 %v4635_v58  ;;  %v4717_v58 = vpack.c.bf16 %v2485_v41, %v2484_v32  ;;  %v2262_v32 = vld [vmem:[%s6416_s6] sm:$0xf] }
 0x740   :  { %4638 = vmatprep.subr.bf16.mxu1 %v4637_v18  ;;  %v2487_v18 = vld [vmem:[%s6414_s7 + $0x1c8] sm:$0xff] }
 0x741   :  { %v4721_v43 = vpack.c.bf16 %v2487_v18, %v2486_v4 }
 0x743   :  { %4640 = vmatpush1.bf16.msra.mxu1 %v4639_v51  ;;  %v2470_v51 = vld [vmem:[%s6414_s7 + $0x140] sm:$0xff] }
 0x7d8   :  { %v1952_v5 = vpop.f32.mrb[22].mxu1 }
 0x7d9   :  { %v6091_v19 = vadd.f32 %v1952_v5, %v5919_v55  ;;  %v3781_v27 = vpop.f32.mrb[23].mxu1  ;;  %v2209_v55 = vld [vmem:[%s6413_s5 + $0x58] sm:$0xff]  ;;  %v2447_v5 = vld [vmem:[%s6414_s7 + $0x88] sm:$0xff] }
 0x7da   :  { %v4645_v31 = vpack.c.bf16 %v2213_v11, %v2209_v55  ;;  %v2478_v27 = vld [vmem:[%s6414_s7 + $0x180] sm:$0xff]  ;;  %v2431_v55 = vld [vmem:[%s6414_s7 + $0x8] sm:$0xff] }
 0x7db   :  { %v4675_v17 = vpack.c.bf16 %v2431_v55, %v2430_v9 }
 0x7f8   :  { %v3412_v42 = vpop.f32.mrb[24].mxu1 }
 0x7f9   :  { %v3413_v47 = vpop.f32.mrb[25].mxu1 }
 0x7fa   :  { %v3414_v1 = vadd.f32 %v3413_v47, %v3412_v42  ;;  %v2479_v42 = vld [vmem:[%s6414_s7 + $0x188] sm:$0xff] }
 0x7fb   :  { %v4705_v47 = vpack.c.bf16 %v2479_v42, %v2478_v27  ;;  %v2488_v27 = vld [vmem:[%s6414_s7 + $0x1d0] sm:$0xff] }
 0x7fc   :  { %v2098_v8 = vadd.f32 %v3414_v1, %v2028_v36  ;;  %v4673_v36 = vpack.c.bf16 %v2447_v5, %v2446_v63  ;;  %v2456_v63 = vld [vmem:[%s6414_s7 + $0xd0] sm:$0xff]  ;;  %v2457_v5 = vld [vmem:[%s6414_s7 + $0xd8] sm:$0xff] }
 0x7fd   :  { %v4693_v9 = vpack.c.bf16 %v2457_v5, %v2456_v63 }
 0x7fe   :  { %v2101_v15 = vmax.f32 %v2098_v8, 0.0  ;;  %4674 = vmatprep.subr.bf16.mxu1 %v4673_v36  ;;  %v2489_v36 = vld [vmem:[%s6414_s7 + $0x1d8] sm:$0xff] }
 0x7ff   :  { %v4725_v55 = vpack.c.bf16 %v2489_v36, %v2488_v27 }
 0x800   :  { %3815 = vmatmul.mubr.f32.vlgmr.msra.gmra.mrb[26].mxu0 %v2101_v15  ;;  %v2463_v15 = vld [vmem:[%s6414_s7 + $0x108] sm:$0xff] }
 0x801   :  { %4644 = vmatpush1.bf16.msra.mxu0 %v4643_v13  ;;  %2419 = vmatprep.mubr.f32.mxu0 %v4743_v53  ;;  %v4651_v53 = vpack.c.bf16 %v2220_v48, %v2216_v39  ;;  %v2462_v13 = vld [vmem:[%s6414_s7 + $0x100] sm:$0xff]  ;;  %v2433_v39 = vld [vmem:[%s6414_s7 + $0x18] sm:$0xff] }
 0x802   :  { %4646 = vmatprep.subr.bf16.mxu0 %v4645_v31  ;;  %v2448_v31 = vld [vmem:[%s6414_s7 + $0x90] sm:$0xff] }
 0x803   :  { %v4677_v61 = vpack.c.bf16 %v2449_v3, %v2448_v31  ;;  %v2490_v31 = vld [vmem:[%s6414_s7 + $0x1e0] sm:$0xff]  ;;  %v2491_v3 = vld [vmem:[%s6414_s7 + $0x1e8] sm:$0xff] }
 0x805   :  { %4648 = vmatpush1.bf16.msra.mxu0 %v4647_v26  ;;  %v4707_v26 = vpack.c.bf16 %v2463_v15, %v2462_v13  ;;  %v2458_v13 = vld [vmem:[%s6414_s7 + $0xe0] sm:$0xff]  ;;  %v2459_v15 = vld [vmem:[%s6414_s7 + $0xe8] sm:$0xff] }
 0x806   :  { %4650 = vmatprep.subr.bf16.mxu0 %v4649_v33  ;;  %v2432_v33 = vld [vmem:[%s6414_s7 + $0x10] sm:$0xff] }
 0x809   :  { %4652 = vmatpush1.bf16.msra.mxu0 %v4651_v53  ;;  %v2464_v53 = vld [vmem:[%s6414_s7 + $0x110] sm:$0xff] }
 0x80a   :  { %4654 = vmatprep.subr.bf16.mxu0 %v4653_v62  ;;  %v2465_v62 = vld [vmem:[%s6414_s7 + $0x118] sm:$0xff] }
 0x80d   :  { %4656 = vmatpush1.bf16.msra.mxu0 %v4655_v37  ;;  %v4679_v37 = vpack.c.bf16 %v2433_v39, %v2432_v33  ;;  %v2443_v33 = vld [vmem:[%s6414_s7 + $0x68] sm:$0xff]  ;;  %v2474_v39 = vld [vmem:[%s6414_s7 + $0x160] sm:$0xff] }
 0x80e   :  { %4658 = vmatprep.subr.bf16.mxu0 %v4657_v46  ;;  %v4711_v46 = vpack.c.bf16 %v2465_v62, %v2464_v53  ;;  %v2460_v53 = vld [vmem:[%s6414_s7 + $0xf0] sm:$0xff]  ;;  %v2461_v62 = vld [vmem:[%s6414_s7 + $0xf8] sm:$0xff] }
 0x80f   :  { %v4701_v14 = vpack.c.bf16 %v2461_v62, %v2460_v53 }
 0x811   :  { %4660 = vmatpush1.bf16.msra.mxu0 %v4659_v28  ;;  %v2466_v28 = vld [vmem:[%s6414_s7 + $0x120] sm:$0xff] }
 0x812   :  { %4662 = vmatprep.subr.bf16.mxu0 %v4661_v29  ;;  %v2467_v29 = vld [vmem:[%s6414_s7 + $0x128] sm:$0xff] }
 0x815   :  { %4664 = vmatpush1.bf16.msra.mxu0 %v4663_v44  ;;  %v4683_v44 = vpack.c.bf16 %v2435_v22, %v2434_v40  ;;  %v2476_v22 = vld [vmem:[%s6414_s7 + $0x170] sm:$0xff] }
 0x816   :  { %4666 = vmatprep.subr.bf16.mxu0 %v4665_v45  ;;  %v4715_v45 = vpack.c.bf16 %v2467_v29, %v2466_v28  ;;  %v2264_v28 = vlaneseq }
 0x818   :  { %v2265_v29 = vshrl.u32 %v2264_v28, 7 }
 0x819   :  { %4668 = vmatpush1.bf16.msra.mxu0 %v4667_v59  ;;  %v2469_v59 = vld [vmem:[%s6414_s7 + $0x138] sm:$0xff] }
 0x81a   :  { %4670 = vmatprep.subr.bf16.mxu0 %v4669_v25  ;;  %v4719_v21 = vpack.c.bf16 %v2469_v59, %v2468_v10  ;;  %v2438_v25 = vld [vmem:[%s6414_s7 + $0x40] sm:$0xff]  ;;  %v2266_v54 = vsub.s32 0, %v2265_v29  ;;  %v2274_v30 = vsub.s32 2, %v2265_v29  ;;  %v2270_v41 = vsub.s32 1, %v2265_v29 }
 0x81b   :  { %v4691_v42 = vpack.c.bf16 %v2439_v34, %v2438_v25 }
 0x81c   :  { %v2275_v49 = vrot.slane %v2262_v32, %v2274_v30  ;;  %v2271_v50 = vrot.slane %v2262_v32, %v2270_v41 }
 0x81d   :  { %4672 = vmatpush1.bf16.msra.mxu0 %v4671_v56  ;;  %v2471_v56 = vld [vmem:[%s6414_s7 + $0x148] sm:$0xff] }
 0x81e   :  { %4706 = vmatprep.subr.bf16.mxu0 %v4705_v47  ;;  %v4723_v47 = vpack.c.bf16 %v2471_v56, %v2470_v51  ;;  %v2648_v56 = vld [vmem:[%s6417_s8] ss:$0 sm:$0xff] }
 0x8d3   :  { %v2184_v1 = vpop.f32.mrb[26].mxu0 }
 0x8d4   :  { %v2188_v11 = vadd.f32 %v2184_v1, %v6091_v19  ;;  %v3816_v8 = vpop.f32.mrb[27].mxu0  ;;  %v2480_v19 = vld [vmem:[%s6414_s7 + $0x190] sm:$0xff] }
 0x8d5   :  { %v4709_v52 = vpack.c.bf16 %v2481_v7, %v2480_v19  ;;  %v2440_v1 = vld [vmem:[%s6414_s7 + $0x50] sm:$0xff]  ;;  %v2473_v8 = vld [vmem:[%s6414_s7 + $0x158] sm:$0xff] }
 0x8d6   :  { %v2196_v16 = vadd.f32 %v2647_v6, %v2188_v11  ;;  %v2441_v6 = vld [vmem:[%s6414_s7 + $0x58] sm:$0xff]  ;;  %v2472_v11 = vld [vmem:[%s6414_s7 + $0x150] sm:$0xff] }
 0x8d7   :  { %v4695_v19 = vpack.c.bf16 %v2441_v6, %v2440_v1  ;;  %v4727_v7 = vpack.c.bf16 %v2473_v8, %v2472_v11 }
 0x8d8   :  { %v2197_v48 = vmax.f32 %v2196_v16, 0.0  ;;  %v4697_v16 = vpack.c.bf16 %v2459_v15, %v2458_v13 }
 0x8da   :  { %2349 = vmatmul.mubr.f32.vlgmr.msra.gmra.mrb[26].mxu1 %v2197_v48  ;;  %2420 = vmatmul.mubr.f32.vlgmr.msra.gmra.mrb[28].mxu0 %v2197_v48 }
 0x8db   :  { %4676 = vmatpush3.bf16.msra.mxu1 %v4675_v17  ;;  %4708 = vmatpush3.bf16.msra.mxu0 %v4707_v26  ;;  %v4729_v17 = vpack.c.bf16 %v2491_v3, %v2490_v31  ;;  %v2442_v26 = vld [vmem:[%s6414_s7 + $0x60] sm:$0xff] }
 0x8dc   :  { %4678 = vmatprep.subr.bf16.mxu1 %v4677_v61  ;;  %4710 = vmatprep.subr.bf16.mxu0 %v4709_v52  ;;  %v4699_v48 = vpack.c.bf16 %v2443_v33, %v2442_v26  ;;  %v2475_v61 = vld [vmem:[%s6414_s7 + $0x168] sm:$0xff] }
 0x8dd   :  { %v4731_v52 = vpack.c.bf16 %v2475_v61, %v2474_v39 }
 0x8df   :  { %4680 = vmatpush3.bf16.msra.mxu1 %v4679_v37  ;;  %4712 = vmatpush3.bf16.msra.mxu0 %v4711_v46  ;;  %v2445_v37 = vld [vmem:[%s6414_s7 + $0x78] sm:$0xff]  ;;  %v4733_v46 = vpack.c.bf16 %v2493_v20, %v2492_v0 }
 0x8e0   :  { %4682 = vmatprep.subr.bf16.mxu1 %v4681_v23  ;;  %4714 = vmatprep.subr.bf16.mxu0 %v4713_v24  ;;  %v4703_v40 = vpack.c.bf16 %v2445_v37, %v2444_v35  ;;  %v2477_v23 = vld [vmem:[%s6414_s7 + $0x178] sm:$0xff] }
 0x8e1   :  { %v4735_v24 = vpack.c.bf16 %v2477_v23, %v2476_v22 }
 0x8e3   :  { %4684 = vmatpush3.bf16.msra.mxu1 %v4683_v44  ;;  %4716 = vmatpush3.bf16.msra.mxu0 %v4715_v45  ;;  %v2278_v44 = vsub.s32 3, %v2265_v29  ;;  %v2267_v45 = vrot.slane %v2262_v32, %v2266_v54 }
 0x8e4   :  { %4686 = vmatprep.subr.bf16.mxu1 %v4685_v57  ;;  %4718 = vmatprep.subr.bf16.mxu0 %v4717_v58 }
 0x8e5   :  { %v2279_v57 = vrot.slane %v2262_v32, %v2278_v44 }
 0x8e7   :  { %4688 = vmatpush3.bf16.msra.mxu1 %v4687_v12  ;;  %4720 = vmatpush3.bf16.msra.mxu0 %v4719_v21 }
 0x8e8   :  { %4690 = vmatprep.subr.bf16.mxu1 %v4689_v38  ;;  %4722 = vmatprep.subr.bf16.mxu0 %v4721_v43 }
 0x8eb   :  { %4692 = vmatpush3.bf16.msra.mxu1 %v4691_v42  ;;  %4724 = vmatpush3.bf16.msra.mxu0 %v4723_v47 }
 0x8ec   :  { %4694 = vmatprep.subr.bf16.mxu1 %v4693_v9  ;;  %4726 = vmatprep.subr.bf16.mxu0 %v4725_v55 }
 0x8ef   :  { %4696 = vmatpush3.bf16.msra.mxu1 %v4695_v19  ;;  %4728 = vmatpush3.bf16.msra.mxu0 %v4727_v7 }
 0x8f0   :  { %4698 = vmatprep.subr.bf16.mxu1 %v4697_v16  ;;  %4730 = vmatprep.subr.bf16.mxu0 %v4729_v17 }
 0x8f3   :  { %4700 = vmatpush3.bf16.msra.mxu1 %v4699_v48  ;;  %4732 = vmatpush3.bf16.msra.mxu0 %v4731_v52 }
 0x8f4   :  { %4702 = vmatprep.subr.bf16.mxu1 %v4701_v14  ;;  %4734 = vmatprep.subr.bf16.mxu0 %v4733_v46 }
 0x8f7   :  { %4704 = vmatpush3.bf16.msra.mxu1 %v4703_v40  ;;  %4736 = vmatpush3.bf16.msra.mxu0 %v4735_v24 }
 0x9ad   :  { %v2350_v58 = vpop.f32.mrb[26].mxu1  ;;  %v2421_v10 = vpop.f32.mrb[28].mxu0 }
 0x9ae   :  { %v2351_v59 = vadd.f32 %v2350_v58, %v2267_v45  ;;  %v2422_v60 = vadd.f32 %v2421_v10, %v2275_v49  ;;  %v2352_v2 = vpop.f32.mrb[27].mxu1  ;;  %v2423_v4 = vpop.f32.mrb[29].mxu0 }
 0x9af   :  { %v2353_v18 = vadd.f32 %v2352_v2, %v2271_v50  ;;  %v2424_v12 = vadd.f32 %v2423_v4, %v2279_v57 }
 0x9b0   :  { %v2426_v34 = vmax.f32 %v2351_v59, 0.0  ;;  %v2428_v38 = vmax.f32 %v2422_v60, 0.0 }
 0x9b1   :  { %v2427_v21 = vmax.f32 %v2353_v18, 0.0  ;;  %v2429_v25 = vmax.f32 %v2424_v12, 0.0 }
 0x9b3   :  { %2565 = vmatprep.mubr.f32.mxu1 %v2427_v21  ;;  %2635 = vmatprep.mubr.f32.mxu0 %v2429_v25 }
 0x9b4   :  { %2566 = vmatmul.mubr.f32.vlgmr.msra.gmra.mrb[28].mxu1 %v2426_v34  ;;  %2636 = vmatmul.mubr.f32.vlgmr.msra.gmra.mrb[30].mxu0 %v2428_v38 }
 0xa87   :  { %v3464_v43 = vpop.f32.mrb[28].mxu1  ;;  %v3499_v51 = vpop.f32.mrb[30].mxu0 }
 0xa88   :  { %v3465_v63 = vpop.f32.mrb[29].mxu1  ;;  %v3500_v5 = vpop.f32.mrb[31].mxu0 }
 0xa89   :  { %v3466_v27 = vadd.f32 %v3465_v63, %v3464_v43  ;;  %v3501_v36 = vadd.f32 %v3500_v5, %v3499_v51 }
 0xa8b   :  { %v2568_v42 = vadd.f32 %v3466_v27, %v2648_v56 }
 0xa8d   :  { %v2638_v47 = vadd.f32 %v3501_v36, %v2568_v42 }
 0xa8f   :  { %2641 = vst [vmem:[%s6418_s9] sm:$0xff] %v2638_v47 }

</bundles_post_ra>
